<compile_context>
chip_gen: v6e
topology: v6e:2x2x1
jax: 0.10.0
libtpu: 0.0.40
codegen_flags: <defaults>
</compile_context>

<pallas_src>
import jax
import jax.numpy as jnp
from jax import lax
from jax.experimental import pallas as pl
from jax.experimental.pallas import tpu as pltpu

# ----------------------------- model hyper-params -----------------------------
B = 32            # batch (demo)
N = 8             # graph size (num vertex slots)
F0 = 8            # initial_hidden (stand-in for len(PRIMITIVES_GHN) + 2)
H = 32            # gcn_hidden (small stand-in for 144)
L = 16            # linear_hidden (small stand-in for 128)
GCN_LAYERS = 3

# Samples fused per grid step.  B // BATCH_TILE must be >= 2 so the 'parallel' grid axis
# can shard across v7x's two TensorCores and the BlockSpec pipeline can double-buffer.
# At real NAS sizes pick BATCH_TILE so BATCH_TILE*N ~ 128 (v5e) / 256 (v6e, v7x).
BATCH_TILE = 8
K = BATCH_TILE * N            # MXU row tile per grid step

# Lane-aligned hidden width: each half of the fused [w1 | w2] weight is zero-padded to a
# multiple of 128 lanes so the xw split never crosses an (8,128) tile boundary.
H_PAD = ((H + 127) // 128) * 128

# Matmul input dtype.  Set to jnp.bfloat16 on v6e/v7x for MXU throughput (accumulation
# stays f32 via preferred_element_type); bf16 exceeds the test tolerance below.
COMPUTE_DTYPE = jnp.float32


# --------------------------------- kernel -------------------------------------
def neural_predictor_kernel(invnv_ref, adj_ref, ops_ref,
                            wcat0_ref, wcat1_ref, wcat2_ref, whead_ref,
                            out_ref, abd_ref):
    bt, n, hp, k = BATCH_TILE, N, H_PAD, K

    # ---------------- preamble: loop-invariant adjacency prep ----------------
    r = lax.broadcasted_iota(jnp.int32, (n, n), 0)
    c = lax.broadcasted_iota(jnp.int32, (n, n), 1)
    eye = (r == c).astype(jnp.float32)

    a = adj_ref[...] + eye[None, :, :]                         # (BT, N, N)
    adj_d = a / jnp.sum(a, axis=2, keepdims=True)              # normalize_adj(adj + I)

    # Block-diagonal (K, K) copy of adj_d via BT masked stores into zeroed VMEM scratch.
    abd_ref[...] = jnp.zeros_like(abd_ref)
    for b in range(bt):                                        # static unroll, tiny stores
        abd_ref[b * n:(b + 1) * n, b * n:(b + 1) * n] = adj_d[b]
    a_bd = abd_ref[...]                                        # (K, K), f32

    # Forward-path row scale: the layer's normalize_adj(adj_d), reassociated out.
    fwd_scale = 1.0 / jnp.sum(a_bd, axis=1, keepdims=True)     # (K, 1)
    # Transposed-path row scale: reciprocal column sums, fetched directly as a column
    # via a trans_a matmul with a ones vector (no transpose / a_inv materialized).
    ones_col = jnp.ones((k, 1), jnp.float32)
    colsum = lax.dot_general(a_bd, ones_col, (((0,), (0,)), ((), ())),
                             preferred_element_type=jnp.float32)   # (K, 1)
    bwd_scale = 1.0 / colsum

    a_c = a_bd.astype(COMPUTE_DTYPE)

    # ---------------- 3 directed-GCN layers, batch fused ----------------
    # The 0.5*(o1+o2) of each layer is pre-folded into the next layer's weights / head.
    x = ops_ref[...].astype(COMPUTE_DTYPE)                     # (K, F_in)
    for wcat_ref in (wcat0_ref, wcat1_ref, wcat2_ref):
        xw = jnp.dot(x, wcat_ref[...],
                     preferred_element_type=jnp.float32)       # (K, 2*H_PAD) = [x@w1 | x@w2]
        xw1 = xw[:, :hp].astype(COMPUTE_DTYPE)                 # 128-lane-aligned split
        xw2 = xw[:, hp:].astype(COMPUTE_DTYPE)
        t1 = jnp.dot(a_c, xw1, preferred_element_type=jnp.float32)        # adj_d   @ xw1
        t2 = lax.dot_general(a_c, xw2, (((0,), (0,)), ((), ())),
                             preferred_element_type=jnp.float32)          # adj_d^T @ xw2
        o1 = jnp.maximum(fwd_scale * t1, 0.0)
        o2 = jnp.maximum(bwd_scale * t2, 0.0)
        x = (o1 + o2).astype(COMPUTE_DTYPE)
        # TODO(synk): nn.Dropout(0.1) inside each GCN layer is identity in eval mode.

    # ------------- reassociated head: y = x @ (fc1 @ fc2), then pooling -------------
    y = jnp.dot(x, whead_ref[...], preferred_element_type=jnp.float32)    # (K, 1)
    srow = lax.broadcasted_iota(jnp.int32, (bt, k), 0)
    scol = lax.broadcasted_iota(jnp.int32, (bt, k), 1)
    sel = (scol >= srow * n) & (scol < srow * n + n)
    pool = jnp.where(sel, invnv_ref[...], 0.0)                 # (BT, K): 1/numv per sample
    # TODO(synk): nn.Dropout(0.1) between fc1 and fc2 is identity in eval mode.
    out_ref[...] = jnp.dot(pool, y, preferred_element_type=jnp.float32)   # (BT, 1)


# -------------------------------- wrapper --------------------------------------
def _prep_weights(params):
    """Fuse twin GCN weights (lane-aligned halves), fold 0.5 layer scale + fc1@fc2 head."""
    def pad_cols(w):
        return jnp.pad(w, ((0, 0), (0, H_PAD - w.shape[1])))

    def pad_rows(w):
        return jnp.pad(w, ((0, H_PAD - w.shape[0]), (0, 0)))

    wcat = []
    for li, (w1, w2) in enumerate(zip(params["w1"], params["w2"])):
        w1p, w2p = pad_cols(w1), pad_cols(w2)
        if li > 0:                                  # layer input is already H_PAD wide
            w1p, w2p = pad_rows(w1p), pad_rows(w2p)
        scale = 1.0 if li == 0 else 0.5             # fold previous layer's 0.5 (exact, 2^-1)
        wcat.append((scale * jnp.concatenate([w1p, w2p], axis=1)).astype(COMPUTE_DTYPE))
    # Pre-folded head (exact only because dropout is identity and there is no
    # bias/activation between fc1 and fc2); 0.5 folds the last GCN layer's scale.
    w_head = pad_rows(0.5 * (params["fc1"] @ params["fc2"])).astype(COMPUTE_DTYPE)
    return wcat, w_head


def neural_predictor(num_vertices, adjacency, operations, params):
    """num_vertices: (B,), adjacency: (B,N,N), operations: (B,N,F0)."""
    b, n, f0 = operations.shape
    assert b % BATCH_TILE == 0, "pad the batch to a multiple of BATCH_TILE"
    steps = b // BATCH_TILE

    ops_flat = operations.reshape(b * n, f0).astype(jnp.float32)      # batch-fused LHS
    inv_nv = (1.0 / num_vertices.astype(jnp.float32)).reshape(b, 1)   # precomputed 1/numv
    wcat, w_head = _prep_weights(params)

    def full_spec(arr):
        return pl.BlockSpec(arr.shape, lambda i: (0,) * arr.ndim)

    out = pl.pallas_call(
        neural_predictor_kernel,
        out_shape=jax.ShapeDtypeStruct((b, 1), jnp.float32),
        grid=(steps,),
        in_specs=[
            pl.BlockSpec((BATCH_TILE, 1), lambda i: (i, 0)),          # 1/num_vertices
            pl.BlockSpec((BATCH_TILE, n, n), lambda i: (i, 0, 0)),    # adjacency tile
            pl.BlockSpec((BATCH_TILE * n, f0), lambda i: (i, 0)),     # operations (flat)
            full_spec(wcat[0]), full_spec(wcat[1]), full_spec(wcat[2]),
            full_spec(w_head),
        ],
        out_specs=pl.BlockSpec((BATCH_TILE, 1), lambda i: (i, 0)),
        scratch_shapes=[pltpu.VMEM((K, K), jnp.float32)],             # block-diag adjacency
        compiler_params=pltpu.CompilerParams(
            dimension_semantics=("parallel",)),
    )(inv_nv, adjacency.astype(jnp.float32), ops_flat,
      wcat[0], wcat[1], wcat[2], w_head)
    return out.reshape(-1)


# ------------------------------ pure-JAX reference ------------------------------
def neural_predictor_ref(num_vertices, adjacency, operations, params):
    n = adjacency.shape[1]
    a = adjacency + jnp.eye(n, dtype=adjacency.dtype)
    adj_d = a / a.sum(axis=2, keepdims=True)
    x = operations
    for w1, w2 in zip(params["w1"], params["w2"]):
        na = adj_d / adj_d.sum(axis=2, keepdims=True)
        ia = jnp.swapaxes(adj_d, 1, 2)
        ina = ia / ia.sum(axis=2, keepdims=True)
        o1 = jax.nn.relu(jnp.einsum("bij,bjk->bik", na, x @ w1))
        o2 = jax.nn.relu(jnp.einsum("bij,bjk->bik", ina, x @ w2))
        x = 0.5 * (o1 + o2)
    pooled = x.sum(axis=1) / num_vertices[:, None]
    return (pooled @ params["fc1"] @ params["fc2"]).reshape(-1)


# ----------------------------- deterministic init -------------------------------
def xavier_uniform(key, shape):
    fan_in, fan_out = shape
    bound = (6.0 / (fan_in + fan_out)) ** 0.5
    return jax.random.uniform(key, shape, jnp.float32, -bound, bound)


def init_params(key):
    keys = jax.random.split(key, 8)
    w1, w2 = [], []
    dims = [(F0, H), (H, H), (H, H)]
    for i, d in enumerate(dims):
        w1.append(xavier_uniform(keys[2 * i], d))
        w2.append(xavier_uniform(keys[2 * i + 1], d))
    # nn.Linear weights stored pre-transposed so the model does x @ W directly.
    fc1 = jax.random.uniform(keys[6], (H, L), jnp.float32,
                             -1.0 / (H ** 0.5), 1.0 / (H ** 0.5))
    fc2 = jax.random.uniform(keys[7], (L, 1), jnp.float32,
                             -1.0 / (L ** 0.5), 1.0 / (L ** 0.5))
    return {"w1": w1, "w2": w2, "fc1": fc1, "fc2": fc2}


# ----------------------------------- main ---------------------------------------
if __name__ == "__main__":
    key = jax.random.PRNGKey(0)
    k_adj, k_ops, k_nv, k_p = jax.random.split(key, 4)

    # DAG-like binary adjacency (strictly upper-triangular), one-hot ops, varied |V|.
    adj = jnp.triu((jax.random.uniform(k_adj, (B, N, N)) > 0.5).astype(jnp.float32), k=1)
    ops = jax.nn.one_hot(jax.random.randint(k_ops, (B, N), 0, F0), F0, dtype=jnp.float32)
    numv = jax.random.randint(k_nv, (B,), 3, N + 1).astype(jnp.float32)

    params = init_params(k_p)

    out = jax.block_until_ready(neural_predictor(numv, adj, ops, params))
    ref = neural_predictor_ref(numv, adj, ops, params)

    assert out.shape == (B,)
    assert jnp.allclose(out, ref, rtol=1e-4, atol=1e-5), (out, ref)
    print("KERNEL_OK")
</pallas_src>

<mosaic_0001>
module attributes {stable_mosaic.version = 11 : i64} {
  func.func @neural_predictor_kernel(%arg0: i32, %arg1: memref<8x1xf32, #tpu.memory_space<vmem>>, %arg2: memref<8x8x8xf32, #tpu.memory_space<vmem>>, %arg3: memref<64x8xf32, #tpu.memory_space<vmem>>, %arg4: memref<8x256xf32, #tpu.memory_space<vmem>>, %arg5: memref<128x256xf32, #tpu.memory_space<vmem>>, %arg6: memref<128x256xf32, #tpu.memory_space<vmem>>, %arg7: memref<128x1xf32, #tpu.memory_space<vmem>>, %arg8: memref<8x1xf32, #tpu.memory_space<vmem>>, %arg9: memref<64x64xf32, #tpu.memory_space<vmem>>) attributes {dimension_semantics = [#tpu.dimension_semantics<parallel>], iteration_bounds = array<i64: 4>, scalar_prefetch = 0 : i64, scratch_operands = 1 : i64, tpu.core_type = #tpu.core_type<tc>, window_params = [{transform_indices = @transform_0, window_bounds = array<i64: 8, 1>}, {transform_indices = @transform_1, window_bounds = array<i64: 8, 8, 8>}, {transform_indices = @transform_2, window_bounds = array<i64: 64, 8>}, {pipeline_mode = #tpu.pipeline_mode<synchronous>, transform_indices = @transform_3, window_bounds = array<i64: 8, 256>}, {pipeline_mode = #tpu.pipeline_mode<synchronous>, transform_indices = @transform_4, window_bounds = array<i64: 128, 256>}, {pipeline_mode = #tpu.pipeline_mode<synchronous>, transform_indices = @transform_5, window_bounds = array<i64: 128, 256>}, {pipeline_mode = #tpu.pipeline_mode<synchronous>, transform_indices = @transform_6, window_bounds = array<i64: 128, 1>}, {transform_indices = @transform_7, window_bounds = array<i64: 8, 1>}]} {
    %0 = tpu.iota {dimensions = array<i32: 0>} : vector<8x8xi32>
    %1 = tpu.iota {dimensions = array<i32: 1>} : vector<8x8xi32>
    %2 = arith.cmpi eq, %0, %1 : vector<8x8xi32>
    %3 = arith.extui %2 : vector<8x8xi1> to vector<8x8xi32>
    %4 = arith.sitofp %3 : vector<8x8xi32> to vector<8x8xf32>
    %c0 = arith.constant 0 : index
    %c0_0 = arith.constant 0 : index
    %c0_1 = arith.constant 0 : index
    %5 = vector.load %arg2[%c0, %c0_0, %c0_1] : memref<8x8x8xf32, #tpu.memory_space<vmem>>, vector<8x8x8xf32>
    %6 = vector.shape_cast %4 : vector<8x8xf32> to vector<1x8x8xf32>
    %7 = vector.broadcast %6 : vector<1x8x8xf32> to vector<8x8x8xf32>
    %8 = arith.addf %5, %7 : vector<8x8x8xf32>
    %cst = arith.constant dense<0.000000e+00> : vector<8x8xf32>
    %9 = vector.multi_reduction <add>, %8, %cst [2] : vector<8x8x8xf32> to vector<8x8xf32>
    %10 = vector.shape_cast %9 : vector<8x8xf32> to vector<8x8x1xf32>
    %11 = vector.broadcast %10 : vector<8x8x1xf32> to vector<8x8x8xf32>
    %12 = arith.divf %8, %11 : vector<8x8x8xf32>
    %cst_2 = arith.constant 0.000000e+00 : f32
    %13 = vector.broadcast %cst_2 : f32 to vector<64x64xf32>
    %c0_3 = arith.constant 0 : index
    %c0_4 = arith.constant 0 : index
    %14 = vector.load %arg9[%c0_3, %c0_4] : memref<64x64xf32, #tpu.memory_space<vmem>>, vector<64x64xf32>
    tpu.vector_store %arg9[%c0_3, %c0_4], %13 {strides = array<i32>} : memref<64x64xf32, #tpu.memory_space<vmem>>, vector<64x64xf32>,
    %15 = vector.extract_strided_slice %12 {offsets = [0, 0, 0], sizes = [1, 8, 8], strides = [1, 1, 1]} : vector<8x8x8xf32> to vector<1x8x8xf32>
    %16 = vector.shape_cast %15 : vector<1x8x8xf32> to vector<8x8xf32>
    %c0_5 = arith.constant 0 : index
    %c0_6 = arith.constant 0 : index
    %17 = vector.load %arg9[%c0_5, %c0_6] : memref<64x64xf32, #tpu.memory_space<vmem>>, vector<8x8xf32>
    tpu.vector_store %arg9[%c0_5, %c0_6], %16 {strides = array<i32>} : memref<64x64xf32, #tpu.memory_space<vmem>>, vector<8x8xf32>,
    %18 = vector.extract_strided_slice %12 {offsets = [1, 0, 0], sizes = [1, 8, 8], strides = [1, 1, 1]} : vector<8x8x8xf32> to vector<1x8x8xf32>
    %19 = vector.shape_cast %18 : vector<1x8x8xf32> to vector<8x8xf32>
    %c8 = arith.constant 8 : index
    %c8_7 = arith.constant 8 : index
    %20 = vector.load %arg9[%c8, %c8_7] : memref<64x64xf32, #tpu.memory_space<vmem>>, vector<8x8xf32>
    tpu.vector_store %arg9[%c8, %c8_7], %19 {strides = array<i32>} : memref<64x64xf32, #tpu.memory_space<vmem>>, vector<8x8xf32>,
    %21 = vector.extract_strided_slice %12 {offsets = [2, 0, 0], sizes = [1, 8, 8], strides = [1, 1, 1]} : vector<8x8x8xf32> to vector<1x8x8xf32>
    %22 = vector.shape_cast %21 : vector<1x8x8xf32> to vector<8x8xf32>
    %c16 = arith.constant 16 : index
    %c16_8 = arith.constant 16 : index
    %23 = vector.load %arg9[%c16, %c16_8] : memref<64x64xf32, #tpu.memory_space<vmem>>, vector<8x8xf32>
    tpu.vector_store %arg9[%c16, %c16_8], %22 {strides = array<i32>} : memref<64x64xf32, #tpu.memory_space<vmem>>, vector<8x8xf32>,
    %24 = vector.extract_strided_slice %12 {offsets = [3, 0, 0], sizes = [1, 8, 8], strides = [1, 1, 1]} : vector<8x8x8xf32> to vector<1x8x8xf32>
    %25 = vector.shape_cast %24 : vector<1x8x8xf32> to vector<8x8xf32>
    %c24 = arith.constant 24 : index
    %c24_9 = arith.constant 24 : index
    %26 = vector.load %arg9[%c24, %c24_9] : memref<64x64xf32, #tpu.memory_space<vmem>>, vector<8x8xf32>
    tpu.vector_store %arg9[%c24, %c24_9], %25 {strides = array<i32>} : memref<64x64xf32, #tpu.memory_space<vmem>>, vector<8x8xf32>,
    %27 = vector.extract_strided_slice %12 {offsets = [4, 0, 0], sizes = [1, 8, 8], strides = [1, 1, 1]} : vector<8x8x8xf32> to vector<1x8x8xf32>
    %28 = vector.shape_cast %27 : vector<1x8x8xf32> to vector<8x8xf32>
    %c32 = arith.constant 32 : index
    %c32_10 = arith.constant 32 : index
    %29 = vector.load %arg9[%c32, %c32_10] : memref<64x64xf32, #tpu.memory_space<vmem>>, vector<8x8xf32>
    tpu.vector_store %arg9[%c32, %c32_10], %28 {strides = array<i32>} : memref<64x64xf32, #tpu.memory_space<vmem>>, vector<8x8xf32>,
    %30 = vector.extract_strided_slice %12 {offsets = [5, 0, 0], sizes = [1, 8, 8], strides = [1, 1, 1]} : vector<8x8x8xf32> to vector<1x8x8xf32>
    %31 = vector.shape_cast %30 : vector<1x8x8xf32> to vector<8x8xf32>
    %c40 = arith.constant 40 : index
    %c40_11 = arith.constant 40 : index
    %32 = vector.load %arg9[%c40, %c40_11] : memref<64x64xf32, #tpu.memory_space<vmem>>, vector<8x8xf32>
    tpu.vector_store %arg9[%c40, %c40_11], %31 {strides = array<i32>} : memref<64x64xf32, #tpu.memory_space<vmem>>, vector<8x8xf32>,
    %33 = vector.extract_strided_slice %12 {offsets = [6, 0, 0], sizes = [1, 8, 8], strides = [1, 1, 1]} : vector<8x8x8xf32> to vector<1x8x8xf32>
    %34 = vector.shape_cast %33 : vector<1x8x8xf32> to vector<8x8xf32>
    %c48 = arith.constant 48 : index
    %c48_12 = arith.constant 48 : index
    %35 = vector.load %arg9[%c48, %c48_12] : memref<64x64xf32, #tpu.memory_space<vmem>>, vector<8x8xf32>
    tpu.vector_store %arg9[%c48, %c48_12], %34 {strides = array<i32>} : memref<64x64xf32, #tpu.memory_space<vmem>>, vector<8x8xf32>,
    %36 = vector.extract_strided_slice %12 {offsets = [7, 0, 0], sizes = [1, 8, 8], strides = [1, 1, 1]} : vector<8x8x8xf32> to vector<1x8x8xf32>
    %37 = vector.shape_cast %36 : vector<1x8x8xf32> to vector<8x8xf32>
    %c56 = arith.constant 56 : index
    %c56_13 = arith.constant 56 : index
    %38 = vector.load %arg9[%c56, %c56_13] : memref<64x64xf32, #tpu.memory_space<vmem>>, vector<8x8xf32>
    tpu.vector_store %arg9[%c56, %c56_13], %37 {strides = array<i32>} : memref<64x64xf32, #tpu.memory_space<vmem>>, vector<8x8xf32>,
    %c0_14 = arith.constant 0 : index
    %c0_15 = arith.constant 0 : index
    %39 = vector.load %arg9[%c0_14, %c0_15] : memref<64x64xf32, #tpu.memory_space<vmem>>, vector<64x64xf32>
    %cst_16 = arith.constant dense<0.000000e+00> : vector<64xf32>
    %40 = vector.multi_reduction <add>, %39, %cst_16 [1] : vector<64x64xf32> to vector<64xf32>
    %41 = vector.shape_cast %40 : vector<64xf32> to vector<64x1xf32>
    %cst_17 = arith.constant 1.000000e+00 : f32
    %42 = vector.broadcast %cst_17 : f32 to vector<64x1xf32>
    %43 = arith.divf %42, %41 : vector<64x1xf32>
    %cst_18 = arith.constant 1.000000e+00 : f32
    %44 = vector.broadcast %cst_18 : f32 to vector<64x1xf32>
    %cst_19 = arith.constant dense<0.000000e+00> : vector<64x1xf32>
    %45 = tpu.matmul %39, %44, %cst_19 {dimension_numbers = #tpu.dot_dimension_numbers<[0], [0], [1], [1], [0, 1, 1, 1], [], []>} : vector<64x64xf32>, vector<64x1xf32>, vector<64x1xf32> -> vector<64x1xf32>
    %cst_20 = arith.constant 1.000000e+00 : f32
    %46 = vector.broadcast %cst_20 : f32 to vector<64x1xf32>
    %47 = arith.divf %46, %45 : vector<64x1xf32>
    %c0_21 = arith.constant 0 : index
    %c0_22 = arith.constant 0 : index
    %48 = vector.load %arg3[%c0_21, %c0_22] : memref<64x8xf32, #tpu.memory_space<vmem>>, vector<64x8xf32>
    %c0_23 = arith.constant 0 : index
    %c0_24 = arith.constant 0 : index
    %49 = vector.load %arg4[%c0_23, %c0_24] : memref<8x256xf32, #tpu.memory_space<vmem>>, vector<8x256xf32>
    %cst_25 = arith.constant dense<0.000000e+00> : vector<64x256xf32>
    %50 = tpu.matmul %48, %49, %cst_25 {dimension_numbers = #tpu.dot_dimension_numbers<[1], [0], [0], [1], [0, 0, 1, 1], [], []>} : vector<64x8xf32>, vector<8x256xf32>, vector<64x256xf32> -> vector<64x256xf32>
    %51 = vector.extract_strided_slice %50 {offsets = [0, 0], sizes = [64, 128], strides = [1, 1]} : vector<64x256xf32> to vector<64x128xf32>
    %52 = vector.extract_strided_slice %50 {offsets = [0, 128], sizes = [64, 128], strides = [1, 1]} : vector<64x256xf32> to vector<64x128xf32>
    %cst_26 = arith.constant dense<0.000000e+00> : vector<64x128xf32>
    %53 = tpu.matmul %39, %51, %cst_26 {dimension_numbers = #tpu.dot_dimension_numbers<[1], [0], [0], [1], [0, 0, 1, 1], [], []>} : vector<64x64xf32>, vector<64x128xf32>, vector<64x128xf32> -> vector<64x128xf32>
    %cst_27 = arith.constant dense<0.000000e+00> : vector<64x128xf32>
    %54 = tpu.matmul %39, %52, %cst_27 {dimension_numbers = #tpu.dot_dimension_numbers<[0], [0], [1], [1], [0, 1, 1, 1], [], []>} : vector<64x64xf32>, vector<64x128xf32>, vector<64x128xf32> -> vector<64x128xf32>
    %55 = vector.broadcast %43 : vector<64x1xf32> to vector<64x128xf32>
    %56 = arith.mulf %55, %53 : vector<64x128xf32>
    %cst_28 = arith.constant 0.000000e+00 : f32
    %57 = vector.broadcast %cst_28 : f32 to vector<64x128xf32>
    %58 = arith.maximumf %56, %57 : vector<64x128xf32>
    %59 = vector.broadcast %47 : vector<64x1xf32> to vector<64x128xf32>
    %60 = arith.mulf %59, %54 : vector<64x128xf32>
    %cst_29 = arith.constant 0.000000e+00 : f32
    %61 = vector.broadcast %cst_29 : f32 to vector<64x128xf32>
    %62 = arith.maximumf %60, %61 : vector<64x128xf32>
    %63 = arith.addf %58, %62 : vector<64x128xf32>
    %c0_30 = arith.constant 0 : index
    %c0_31 = arith.constant 0 : index
    %64 = vector.load %arg5[%c0_30, %c0_31] : memref<128x256xf32, #tpu.memory_space<vmem>>, vector<128x256xf32>
    %cst_32 = arith.constant dense<0.000000e+00> : vector<64x256xf32>
    %65 = tpu.matmul %63, %64, %cst_32 {dimension_numbers = #tpu.dot_dimension_numbers<[1], [0], [0], [1], [0, 0, 1, 1], [], []>} : vector<64x128xf32>, vector<128x256xf32>, vector<64x256xf32> -> vector<64x256xf32>
    %66 = vector.extract_strided_slice %65 {offsets = [0, 0], sizes = [64, 128], strides = [1, 1]} : vector<64x256xf32> to vector<64x128xf32>
    %67 = vector.extract_strided_slice %65 {offsets = [0, 128], sizes = [64, 128], strides = [1, 1]} : vector<64x256xf32> to vector<64x128xf32>
    %cst_33 = arith.constant dense<0.000000e+00> : vector<64x128xf32>
    %68 = tpu.matmul %39, %66, %cst_33 {dimension_numbers = #tpu.dot_dimension_numbers<[1], [0], [0], [1], [0, 0, 1, 1], [], []>} : vector<64x64xf32>, vector<64x128xf32>, vector<64x128xf32> -> vector<64x128xf32>
    %cst_34 = arith.constant dense<0.000000e+00> : vector<64x128xf32>
    %69 = tpu.matmul %39, %67, %cst_34 {dimension_numbers = #tpu.dot_dimension_numbers<[0], [0], [1], [1], [0, 1, 1, 1], [], []>} : vector<64x64xf32>, vector<64x128xf32>, vector<64x128xf32> -> vector<64x128xf32>
    %70 = vector.broadcast %43 : vector<64x1xf32> to vector<64x128xf32>
    %71 = arith.mulf %70, %68 : vector<64x128xf32>
    %cst_35 = arith.constant 0.000000e+00 : f32
    %72 = vector.broadcast %cst_35 : f32 to vector<64x128xf32>
    %73 = arith.maximumf %71, %72 : vector<64x128xf32>
    %74 = vector.broadcast %47 : vector<64x1xf32> to vector<64x128xf32>
    %75 = arith.mulf %74, %69 : vector<64x128xf32>
    %cst_36 = arith.constant 0.000000e+00 : f32
    %76 = vector.broadcast %cst_36 : f32 to vector<64x128xf32>
    %77 = arith.maximumf %75, %76 : vector<64x128xf32>
    %78 = arith.addf %73, %77 : vector<64x128xf32>
    %c0_37 = arith.constant 0 : index
    %c0_38 = arith.constant 0 : index
    %79 = vector.load %arg6[%c0_37, %c0_38] : memref<128x256xf32, #tpu.memory_space<vmem>>, vector<128x256xf32>
    %cst_39 = arith.constant dense<0.000000e+00> : vector<64x256xf32>
    %80 = tpu.matmul %78, %79, %cst_39 {dimension_numbers = #tpu.dot_dimension_numbers<[1], [0], [0], [1], [0, 0, 1, 1], [], []>} : vector<64x128xf32>, vector<128x256xf32>, vector<64x256xf32> -> vector<64x256xf32>
    %81 = vector.extract_strided_slice %80 {offsets = [0, 0], sizes = [64, 128], strides = [1, 1]} : vector<64x256xf32> to vector<64x128xf32>
    %82 = vector.extract_strided_slice %80 {offsets = [0, 128], sizes = [64, 128], strides = [1, 1]} : vector<64x256xf32> to vector<64x128xf32>
    %cst_40 = arith.constant dense<0.000000e+00> : vector<64x128xf32>
    %83 = tpu.matmul %39, %81, %cst_40 {dimension_numbers = #tpu.dot_dimension_numbers<[1], [0], [0], [1], [0, 0, 1, 1], [], []>} : vector<64x64xf32>, vector<64x128xf32>, vector<64x128xf32> -> vector<64x128xf32>
    %cst_41 = arith.constant dense<0.000000e+00> : vector<64x128xf32>
    %84 = tpu.matmul %39, %82, %cst_41 {dimension_numbers = #tpu.dot_dimension_numbers<[0], [0], [1], [1], [0, 1, 1, 1], [], []>} : vector<64x64xf32>, vector<64x128xf32>, vector<64x128xf32> -> vector<64x128xf32>
    %85 = vector.broadcast %43 : vector<64x1xf32> to vector<64x128xf32>
    %86 = arith.mulf %85, %83 : vector<64x128xf32>
    %cst_42 = arith.constant 0.000000e+00 : f32
    %87 = vector.broadcast %cst_42 : f32 to vector<64x128xf32>
    %88 = arith.maximumf %86, %87 : vector<64x128xf32>
    %89 = vector.broadcast %47 : vector<64x1xf32> to vector<64x128xf32>
    %90 = arith.mulf %89, %84 : vector<64x128xf32>
    %cst_43 = arith.constant 0.000000e+00 : f32
    %91 = vector.broadcast %cst_43 : f32 to vector<64x128xf32>
    %92 = arith.maximumf %90, %91 : vector<64x128xf32>
    %93 = arith.addf %88, %92 : vector<64x128xf32>
    %c0_44 = arith.constant 0 : index
    %c0_45 = arith.constant 0 : index
    %94 = vector.load %arg7[%c0_44, %c0_45] : memref<128x1xf32, #tpu.memory_space<vmem>>, vector<128x1xf32>
    %cst_46 = arith.constant dense<0.000000e+00> : vector<64x1xf32>
    %95 = tpu.matmul %93, %94, %cst_46 {dimension_numbers = #tpu.dot_dimension_numbers<[1], [0], [0], [1], [0, 0, 1, 1], [], []>} : vector<64x128xf32>, vector<128x1xf32>, vector<64x1xf32> -> vector<64x1xf32>
    %96 = tpu.iota {dimensions = array<i32: 0>} : vector<8x64xi32>
    %97 = tpu.iota {dimensions = array<i32: 1>} : vector<8x64xi32>
    %c8_i32 = arith.constant 8 : i32
    %98 = vector.broadcast %c8_i32 : i32 to vector<8x64xi32>
    %99 = arith.muli %96, %98 : vector<8x64xi32>
    %100 = arith.cmpi sge, %97, %99 : vector<8x64xi32>
    %c8_i32_47 = arith.constant 8 : i32
    %101 = vector.broadcast %c8_i32_47 : i32 to vector<8x64xi32>
    %102 = arith.muli %96, %101 : vector<8x64xi32>
    %c8_i32_48 = arith.constant 8 : i32
    %103 = vector.broadcast %c8_i32_48 : i32 to vector<8x64xi32>
    %104 = arith.addi %102, %103 : vector<8x64xi32>
    %105 = arith.cmpi slt, %97, %104 : vector<8x64xi32>
    %106 = arith.andi %100, %105 : vector<8x64xi1>
    %c0_49 = arith.constant 0 : index
    %c0_50 = arith.constant 0 : index
    %107 = vector.load %arg1[%c0_49, %c0_50] : memref<8x1xf32, #tpu.memory_space<vmem>>, vector<8x1xf32>
    %cst_51 = arith.constant 0.000000e+00 : f32
    %108 = vector.shape_cast %107 : vector<8x1xf32> to vector<8x1xf32>
    %109 = vector.broadcast %108 : vector<8x1xf32> to vector<8x64xf32>
    %110 = vector.broadcast %cst_51 : f32 to vector<8x64xf32>
    %111 = arith.select %106, %109, %110 : vector<8x64xi1>, vector<8x64xf32>
    %cst_52 = arith.constant dense<0.000000e+00> : vector<8x1xf32>
    %112 = tpu.matmul %111, %95, %cst_52 {dimension_numbers = #tpu.dot_dimension_numbers<[1], [0], [0], [1], [0, 0, 1, 1], [], []>} : vector<8x64xf32>, vector<64x1xf32>, vector<8x1xf32> -> vector<8x1xf32>
    %c0_53 = arith.constant 0 : index
    %c0_54 = arith.constant 0 : index
    %113 = vector.load %arg8[%c0_53, %c0_54] : memref<8x1xf32, #tpu.memory_space<vmem>>, vector<8x1xf32>
    tpu.vector_store %arg8[%c0_53, %c0_54], %112 {strides = array<i32>} : memref<8x1xf32, #tpu.memory_space<vmem>>, vector<8x1xf32>,
    return
  }
  func.func @transform_0(%arg0: i32) -> (i32, i32) {
    %c0_i32 = arith.constant 0 : i32
    %c0_i32_0 = arith.constant 0 : i32
    return %arg0, %c0_i32 : i32, i32
  }
  func.func @transform_1(%arg0: i32) -> (i32, i32, i32) {
    %c0_i32 = arith.constant 0 : i32
    %c0_i32_0 = arith.constant 0 : i32
    %c0_i32_1 = arith.constant 0 : i32
    return %arg0, %c0_i32, %c0_i32_0 : i32, i32, i32
  }
  func.func @transform_2(%arg0: i32) -> (i32, i32) {
    %c0_i32 = arith.constant 0 : i32
    %c0_i32_0 = arith.constant 0 : i32
    return %arg0, %c0_i32 : i32, i32
  }
  func.func @transform_3(%arg0: i32) -> (i32, i32) {
    %c0_i32 = arith.constant 0 : i32
    %c0_i32_0 = arith.constant 0 : i32
    %c0_i32_1 = arith.constant 0 : i32
    return %c0_i32, %c0_i32_0 : i32, i32
  }
  func.func @transform_4(%arg0: i32) -> (i32, i32) {
    %c0_i32 = arith.constant 0 : i32
    %c0_i32_0 = arith.constant 0 : i32
    %c0_i32_1 = arith.constant 0 : i32
    return %c0_i32, %c0_i32_0 : i32, i32
  }
  func.func @transform_5(%arg0: i32) -> (i32, i32) {
    %c0_i32 = arith.constant 0 : i32
    %c0_i32_0 = arith.constant 0 : i32
    %c0_i32_1 = arith.constant 0 : i32
    return %c0_i32, %c0_i32_0 : i32, i32
  }
  func.func @transform_6(%arg0: i32) -> (i32, i32) {
    %c0_i32 = arith.constant 0 : i32
    %c0_i32_0 = arith.constant 0 : i32
    %c0_i32_1 = arith.constant 0 : i32
    return %c0_i32, %c0_i32_0 : i32, i32
  }
  func.func @transform_7(%arg0: i32) -> (i32, i32) {
    %c0_i32 = arith.constant 0 : i32
    %c0_i32_0 = arith.constant 0 : i32
    return %arg0, %c0_i32 : i32, i32
  }
}

</mosaic_0001>

<bundles_post_ra>
// kernel: tpu_custom_call.1
= control target key start
LH: loop header
LB: loop body
LE: loop exit
PB: predicated region body
PF: predicated region fallthrough
CT: control target
= control target key end

     0   :  { %s2810_s24 = smov 0   ;;  %s3487_s0 = inlined_call_operand.vmem [shape: f32[32,1], index: 0, kind: input, shape index: {}]   ;;  %s3488_s1 = inlined_call_operand.vmem [shape: f32[32,8,8], index: 1, kind: input, shape index: {}]   ;;  %s3489_s2 = inlined_call_operand.vmem [shape: f32[256,8], index: 2, kind: input, shape index: {}]   ;;  %s3490_s3 = inlined_call_operand.vmem [shape: f32[8,256], index: 3, kind: input, shape index: {}]   ;;  %s3491_s4 = inlined_call_operand.vmem [shape: f32[128,256], index: 4, kind: input, shape index: {}]   ;;  %s3492_s5 = inlined_call_operand.vmem [shape: f32[128,256], index: 5, kind: input, shape index: {}]   ;;  %s3493_s6 = inlined_call_operand.vmem [shape: f32[128,1], index: 6, kind: input, shape index: {}]   ;;  %s3494_s7 = inlined_call_operand.vmem [shape: f32[32,1], index: 7, kind: output, shape index: {}]  }
   0x1 LB: > { %s2816_s25 = sadd.s32 4294967295, %s2757_s24   ;;  %p2199_p0 = scmp.ge.s32.totalorder %s2757_s24, 1  ;;  %s2757_s24 = sphi %s2810_s24, %s17_s24  }
   0x2   : > { %p258_p1 = scmp.lt.s32.totalorder %s2757_s24, 5 }
   0x4   : > { %p259_p2 = pnand %p2199_p0, %p258_p1 }
   0x5   : > { %s2201_s26 = sshll.u32 (!%p259_p2), %s2816_s25, 3  ;;  %s2760_s15 = smov (!%p259_p2), 8  }
   0x6   : > { %262 = sbr.rel (%p259_p2) target bundleno = 2120 (0x848), region = 48  ;;  %p303_p3 = scmp.lt.s32.totalorder (!%p259_p2), %s2201_s26, 31 }
   0x7   : > { %s2761_s16 = smov (!%p259_p2), 16   ;;  %s2762_s17 = smov (!%p259_p2), 24  }
   0x8   : > { %s2763_s18 = smov (!%p259_p2), 40   ;;  %s2764_s19 = smov (!%p259_p2), 32  }
   0x9   : > { %s2765_s20 = smov (!%p259_p2), 56   ;;  %s2766_s21 = smov (!%p259_p2), 48  }
   0xa   : > { %p298_p4 = scmp.lt.s32.totalorder (!%p259_p2), %s2816_s25, 3 }
   0xb   : > { %v318_v0 = vlaneseq  ;;  %v668_v1 = vld [vmem:[%s3490_s3 + $0x8] sm:$0xff]  ;;  %v667_v2 = vld [vmem:[%s3490_s3] sm:$0xff]  ;;  %v2759_v3 = vmov 0.0   ;;  %s3496_s26 = smov (!%p303_p3, %s2201_s26), 31  ;;  %vm341_vm1 = vcmask 64512   ;;  %vm382_vm2 = vcmask 523264  }
   0xc   : > { %723 = vmatprep.subr.mxu1 %v668_v1  ;;  %757 = vmatprep.mubr.f32.mxu1 %v2759_v3  ;;  %s2202_s8 = sshll.u32 %s3496_s26, 3  ;;  %383 = vst.msk [vmem:[#allocation2] sm:$0xff] %vm382_vm2, %v2759_v3  ;;  %384 = vst.msk [vmem:[#allocation2 + $0x8] sm:$0xff] %vm382_vm2, %v2759_v3  ;;  %vm396_vm3 = vcmask 130112   ;;  %vm402_vm4 = vcmask 195712   ;;  %vm408_vm5 = vcmask 261312  }
   0xd   : > { %v2828_v4 = vshrl.u32 %v318_v0, 7  ;;  %v2830_v5 = vand.u32 127, %v318_v0  ;;  %724 = vmatpush1.msra.mxu1 %v667_v2  ;;  %s306_s11 = scalar_lea.vmem %s3488_s1, %s2202_s8  ;;  %s2841_s14 = scalar_lea.vmem %s3489_s2, %s2202_s8  ;;  %385 = vst.msk [vmem:[#allocation2 + $0x10] sm:$0xff] %vm382_vm2, %v2759_v3  ;;  %386 = vst.msk [vmem:[#allocation2 + $0x18] sm:$0xff] %vm382_vm2, %v2759_v3  ;;  %vm420_vm6 = vcmask 392512   ;;  %vm414_vm7 = vcmask 326912  }
   0xe   : > { %v326_v7 = vld [vmem:[%s306_s11 + $0x8] sm:$0xff]  ;;  %v327_v8 = vld [vmem:[%s306_s11 + $0x10] sm:$0xff]  ;;  %v328_v9 = vld [vmem:[%s306_s11 + $0x18] sm:$0xff]  ;;  %387 = vst.msk [vmem:[#allocation2 + $0x20] sm:$0xff] %vm382_vm2, %v2759_v3  ;;  %vm432_vm8 = vcmask 523712   ;;  %vm426_vm9 = vcmask 458112  }
   0xf   : > { %vm322_vm0 = vcmp.eq.s32.totalorder %v2828_v4, %v2830_v5  ;;  %v329_v13 = vld [vmem:[%s306_s11 + $0x20] sm:$0xff]  ;;  %v330_v15 = vld [vmem:[%s306_s11 + $0x28] sm:$0xff]  ;;  %v331_v16 = vld [vmem:[%s306_s11 + $0x30] sm:$0xff]  ;;  %388 = vst.msk [vmem:[#allocation2 + $0x28] sm:$0xff] %vm382_vm2, %v2759_v3  ;;  %s3498_s25 = smov (!%p298_p4, %s2816_s25), 3  ;;  %vm2769_vm10 = vmmov 0  }
  0x10   : > { %v2206_v6 = vsel %vm322_vm0, 1.0, %v2759_v3  ;;  %v659_v17 = vld [vmem:[%s2841_s14] sm:$0xff]  ;;  %v660_v20 = vld [vmem:[%s2841_s14 + $0x8] sm:$0xff]  ;;  %v332_v25 = vld [vmem:[%s306_s11 + $0x38] sm:$0xff]  ;;  %389 = vst.msk [vmem:[#allocation2 + $0x30] sm:$0xff] %vm382_vm2, %v2759_v3  ;;  %s2200_s23 = sshll.u32 %s3498_s25, 3 }
  0x11   : > { %v2843_v10 = vadd.f32 %v2206_v6, %v326_v7  ;;  %v2845_v11 = vadd.f32 %v2206_v6, %v327_v8  ;;  %v2847_v12 = vadd.f32 %v2206_v6, %v328_v9  ;;  %v2849_v14 = vadd.f32 %v2206_v6, %v329_v13  ;;  %2215 = vmatmul.mubr.msk.f32.vlgmr.msra.gmra.mxu1 %vm341_vm1, %v659_v17  ;;  %v325_v26 = vld [vmem:[%s306_s11] sm:$0xff]  ;;  %v661_v27 = vld [vmem:[%s2841_s14 + $0x10] sm:$0xff]  ;;  %v662_v32 = vld [vmem:[%s2841_s14 + $0x18] sm:$0xff]  ;;  %s301_s28 = scalar_lea.vmem %s3487_s0, %s2200_s23  ;;  %s317_s27 = scalar_lea.vmem %s3494_s7, %s2200_s23 }
  0x12   : > { %v2862_v23 = vadd.f32 %v2206_v6, %v330_v15  ;;  %v2864_v24 = vadd.f32 %v2206_v6, %v331_v16  ;;  %763 = vmatprep.mubr.f32.mxu1 %v2759_v3  ;;  %v2873_v30 = vadd.f32 %v2206_v6, %v332_v25  ;;  %v2876_v31 = vadd.f32 %v2206_v6, %v325_v26  ;;  %v663_v35 = vld [vmem:[%s2841_s14 + $0x20] sm:$0xff]  ;;  %v664_v36 = vld [vmem:[%s2841_s14 + $0x28] sm:$0xff]  ;;  %v665_v37 = vld [vmem:[%s2841_s14 + $0x30] sm:$0xff] }
  0x13   : > { %v345_v18 = vsel %vm341_vm1, %v2843_v10, 0.0  ;;  %v351_v19 = vsel %vm341_vm1, %v2847_v12, 0.0  ;;  %v348_v21 = vsel %vm341_vm1, %v2845_v11, 0.0  ;;  %v354_v22 = vsel %vm341_vm1, %v2849_v14, 0.0  ;;  %v666_v38 = vld [vmem:[%s2841_s14 + $0x38] sm:$0xff]  ;;  %390 = vst.msk [vmem:[#allocation2 + $0x38] sm:$0xff] %vm382_vm2, %v2759_v3 }
  0x14   : > { %346 = vadd.xlane.f32.xlu0 %v345_v18  ;;  %352 = vadd.xlane.f32.xlu1 %v351_v19  ;;  %v357_v28 = vsel %vm341_vm1, %v2862_v23, 0.0  ;;  %v360_v29 = vsel %vm341_vm1, %v2864_v24, 0.0  ;;  %v363_v33 = vsel %vm341_vm1, %v2873_v30, 0.0  ;;  %v342_v34 = vsel %vm341_vm1, %v2876_v31, 0.0 }
  0x15   : > { %2216 = vmatmul.mubr.msk.f32.gmra.mxu1 %vm341_vm1, %v660_v20  ;;  %v2767_v16 = vmov 1.0   ;;  %vm2116_vm14 = vcmask 7168  }
  0x16   : > { %769 = vmatprep.mubr.f32.mxu1 %v2759_v3  ;;  %2419 = vmatprep.subr.mxu0 %v2767_v16 }
  0x17   : > { %2420 = vmatpush3.msra.mxu0 %v2767_v16 }
  0x18   : > { %349 = vadd.xlane.f32.xlu0 %v348_v21  ;;  %355 = vadd.xlane.f32.xlu1 %v354_v22 }
  0x19   : > { %2217 = vmatmul.mubr.msk.f32.gmra.mxu1 %vm341_vm1, %v661_v27  ;;  %2421 = vmatprep.subr.mxu0 %v2767_v16 }
  0x1a   : > { %775 = vmatprep.mubr.f32.mxu1 %v2759_v3  ;;  %2422 = vmatpush3.msra.mxu0 %v2767_v16 }
  0x1b   : > { %2423 = vmatprep.subr.mxu0 %v2767_v16 }
  0x1c   : > { %358 = vadd.xlane.f32.xlu0 %v357_v28  ;;  %361 = vadd.xlane.f32.xlu1 %v360_v29 }
  0x1d   : > { %2218 = vmatmul.mubr.msk.f32.gmra.mxu1 %vm341_vm1, %v662_v32  ;;  %2424 = vmatpush3.msra.mxu0 %v2767_v16 }
  0x1e   : > { %781 = vmatprep.mubr.f32.mxu1 %v2759_v3  ;;  %2425 = vmatprep.subr.mxu0 %v2767_v16 }
  0x1f   : > { %2426 = vmatpush3.msra.mxu0 %v2767_v16 }
  0x20   : > { %364 = vadd.xlane.f32.xlu0 %v363_v33  ;;  %343 = vadd.xlane.f32.xlu1 %v342_v34 }
  0x21   : > { %2219 = vmatmul.mubr.msk.f32.gmra.mxu1 %vm341_vm1, %v663_v35  ;;  %2427 = vmatprep.subr.mxu0 %v2767_v16 }
  0x22   : > { %787 = vmatprep.mubr.f32.mxu1 %v2759_v3  ;;  %2428 = vmatpush3.msra.mxu0 %v2767_v16 }
  0x23   : > { %2429 = vmatprep.subr.mxu0 %v2767_v16 }
  0x24   : > { %2430 = vmatpush3.msra.mxu0 %v2767_v16 }
  0x25   : > { %2220 = vmatmul.mubr.msk.f32.gmra.mxu1 %vm341_vm1, %v664_v36  ;;  %2431 = vmatprep.subr.mxu0 %v2767_v16 }
  0x26   : > { %793 = vmatprep.mubr.f32.mxu1 %v2759_v3  ;;  %2432 = vmatpush3.msra.mxu0 %v2767_v16 }
  0x27   : > { %2433 = vmatprep.subr.mxu0 %v2767_v16 }
  0x28   : > { %2434 = vmatpush3.msra.mxu0 %v2767_v16  ;;  %v1129_v16 = vld [vmem:[%s3491_s4 + $0x48] sm:$0xff] }
  0x29   : > { %2221 = vmatmul.mubr.msk.f32.gmra.mxu1 %vm341_vm1, %v665_v37 }
  0x2a   : > { %799 = vmatprep.mubr.f32.mxu1 %v2759_v3 }
  0x2d   : > { %2222 = vmatmul.mubr.msk.f32.gmra.mxu1 %vm341_vm1, %v666_v38 }
  0x9d   : > { %v347_v39 = vpop.xlane.xlu0 %346  ;;  %v353_v40 = vpop.xlane.xlu1 %352 }
  0x9e   : > { %2699 = vrcp.f32 %v347_v39 }
  0x9f   : > { %2701 = vrcp.f32 %v353_v40 }
  0xa1   : > { %v350_v41 = vpop.xlane.xlu0 %349  ;;  %v356_v42 = vpop.xlane.xlu1 %355 }
  0xa2   : > { %2703 = vrcp.f32 %v350_v41 }
  0xa3   : > { %2705 = vrcp.f32 %v356_v42 }
  0xa5   : > { %v359_v43 = vpop.xlane.xlu0 %358  ;;  %v362_v44 = vpop.xlane.xlu1 %361 }
  0xa6   : > { %2707 = vrcp.f32 %v359_v43 }
  0xa7   : > { %2709 = vrcp.f32 %v362_v44 }
  0xa9   : > { %v365_v45 = vpop.xlane.xlu0 %364  ;;  %v344_v46 = vpop.xlane.xlu1 %343 }
  0xaa   : > { %2711 = vrcp.f32 %v365_v45 }
  0xab   : > { %v2700_v47 = vpop.eup %2699  ;;  %2713 = vrcp.f32 %v344_v46 }
  0xac   : > { %v369_v48 = vmul.f32 %v2700_v47, %v2843_v10  ;;  %v2702_v49 = vpop.eup %2701 }
  0xad   : > { %v373_v53 = vmul.f32 %v2702_v49, %v2847_v12  ;;  %v2768_v49 = vmov 0  }
  0xae   : > { %393 = vrot.lane.b32.xlu0 %v369_v48, %s2760_s15 }
  0xaf   : > { %v2704_v50 = vpop.eup %2703  ;;  %2697 = vset.pattern.permute.xlu0 %v2768_v49 }
  0xb0   : > { %v371_v51 = vmul.f32 %v2704_v50, %v2845_v11  ;;  %v2706_v52 = vpop.eup %2705  ;;  %v1151_v50 = vld [vmem:[%s3491_s4 + $0xf8] sm:$0xff] }
  0xb1   : > { %v375_v57 = vmul.f32 %v2706_v52, %v2849_v14  ;;  %v1149_v52 = vld [vmem:[%s3491_s4 + $0xe8] sm:$0xff]  ;;  %1152 = vmatprep.subr.mxu0 %v1151_v50 }
  0xb2   : > { %399 = vrot.lane.b32.xlu1 %v371_v51, %s2761_s16  ;;  %v1150_v51 = vld [vmem:[%s3491_s4 + $0xf0] sm:$0xff] }
  0xb3   : > { %v2708_v54 = vpop.eup %2707 }
  0xb4   : > { %v377_v55 = vmul.f32 %v2708_v54, %v2862_v23  ;;  %v2710_v56 = vpop.eup %2709  ;;  %v1147_v54 = vld [vmem:[%s3491_s4 + $0xd8] sm:$0xff] }
  0xb5   : > { %v379_v62 = vmul.f32 %v2710_v56, %v2864_v24  ;;  %v1145_v56 = vld [vmem:[%s3491_s4 + $0xc8] sm:$0xff] }
  0xb6   : > { %405 = vrot.lane.b32.xlu1 %v373_v53, %s2762_s17  ;;  %417 = vrot.lane.b32.xlu0 %v377_v55, %s2763_s18  ;;  %v1148_v53 = vld [vmem:[%s3491_s4 + $0xe0] sm:$0xff]  ;;  %v1146_v55 = vld [vmem:[%s3491_s4 + $0xd0] sm:$0xff] }
  0xb7   : > { %v2712_v58 = vpop.eup %2711 }
  0xb8   : > { %v2714_v59 = vpop.eup %2713  ;;  %v381_v60 = vmul.f32 %v2712_v58, %v2873_v30  ;;  %v1143_v58 = vld [vmem:[%s3491_s4 + $0xb8] sm:$0xff] }
  0xb9   : > { %v367_v61 = vmul.f32 %v2714_v59, %v2876_v31  ;;  %v1142_v59 = vld [vmem:[%s3491_s4 + $0xb0] sm:$0xff] }
  0xba   : > { %411 = vrot.lane.b32.xlu1 %v375_v57, %s2764_s19  ;;  %429 = vrot.lane.b32.xlu0 %v381_v60, %s2765_s20  ;;  %v1144_v57 = vld [vmem:[%s3491_s4 + $0xc0] sm:$0xff]  ;;  %v1141_v60 = vld [vmem:[%s3491_s4 + $0xa8] sm:$0xff] }
  0xbb   : > { %391 = vst.msk [vmem:[#allocation2] sm:$0xff] %vm341_vm1, %v367_v61  ;;  %v1140_v61 = vld [vmem:[%s3491_s4 + $0xa0] sm:$0xff] }
  0xbe   : > { %423 = vrot.lane.b32.xlu1 %v379_v62, %s2766_s21  ;;  %v1139_v62 = vld [vmem:[%s3491_s4 + $0x98] sm:$0xff] }
  0xc2   : > { %v2923_v63 = vld [vmem:[#allocation2] sm:$0xff] }
  0xc3   : > { %2463 = vmatprep.mubr.msk.f32.mxu1 %vm382_vm2, %v2923_v63  ;;  %v442_v2 = vsel %vm382_vm2, %v2923_v63, 0.0 }
  0xd1   : > { %v759_v0 = vpop.f32.mrf.mxu1 }
  0xd3   : > { %v2927_v1 = vpop.f32.mrf.mxu1 }
  0xd5   : > { %v765_v6 = vpop.f32.mrf.mxu1 }
  0xd7   : > { %v2931_v7 = vpop.f32.mrf.mxu1 }
  0xd9   : > { %443 = vadd.xlane.f32.xlu0 %v442_v2  ;;  %v771_v8 = vpop.f32.mrf.mxu1  ;;  %v1136_v2 = vld [vmem:[%s3491_s4 + $0x80] sm:$0xff] }
  0xdb   : > { %v2933_v9 = vpop.f32.mrf.mxu1 }
  0xdd   : > { %v777_v10 = vpop.f32.mrf.mxu1 }
  0xdf   : > { %v2935_v11 = vpop.f32.mrf.mxu1 }
  0xe1   : > { %v783_v12 = vpop.f32.mrf.mxu1 }
  0xe3   : > { %v2937_v13 = vpop.f32.mrf.mxu1 }
  0xe5   : > { %v789_v14 = vpop.f32.mrf.mxu1 }
  0xe7   : > { %482 = vxpose.xlu1.b32.start [1/8] (short) (narrow) %v2923_v63, 64  ;;  %v2940_v15 = vpop.f32.mrf.mxu1 }
  0xe9   : > { %v795_v17 = vpop.f32.mrf.mxu1 }
  0xeb   : > { %v797_v18 = vpop.f32.mrf.mxu1 }
  0xed   : > { %v801_v19 = vpop.f32.mrf.mxu1 }
  0xee   : > { %2447 = vmatprep.subr.mxu1 %v801_v19 }
  0xef   : > { %2448 = vmatpush3.msra.mxu1 %v801_v19  ;;  %v803_v20 = vpop.f32.mrf.mxu1  ;;  %v1126_v19 = vld [vmem:[%s3491_s4 + $0x30] sm:$0xff] }
  0xf0   : > { %2449 = vmatprep.subr.mxu1 %v795_v17 }
  0xf1   : > { %2450 = vmatpush3.msra.mxu1 %v795_v17  ;;  %v1128_v17 = vld [vmem:[%s3491_s4 + $0x40] sm:$0xff] }
  0xf2   : > { %2451 = vmatprep.subr.mxu1 %v789_v14 }
  0xf3   : > { %2452 = vmatpush3.msra.mxu1 %v789_v14 }
  0xf4   : > { %2453 = vmatprep.subr.mxu1 %v783_v12 }
  0xf5   : > { %2454 = vmatpush3.msra.mxu1 %v783_v12 }
  0xf6   : > { %2455 = vmatprep.subr.mxu1 %v777_v10 }
  0xf7   : > { %2456 = vmatpush3.msra.mxu1 %v777_v10  ;;  %v1131_v10 = vld [vmem:[%s3491_s4 + $0x58] sm:$0xff] }
  0xf8   : > { %2457 = vmatprep.subr.mxu1 %v771_v8 }
  0xf9   : > { %2458 = vmatpush3.msra.mxu1 %v771_v8  ;;  %v1133_v8 = vld [vmem:[%s3491_s4 + $0x68] sm:$0xff] }
  0xfa   : > { %2459 = vmatprep.subr.mxu1 %v765_v6 }
  0xfb   : > { %2460 = vmatpush3.msra.mxu1 %v765_v6  ;;  %v1135_v6 = vld [vmem:[%s3491_s4 + $0x78] sm:$0xff] }
  0xfc   : > { %2461 = vmatprep.subr.mxu1 %v759_v0 }
  0xfd   : > { %2462 = vmatpush3.msra.mxu1 %v759_v0  ;;  %v1138_v0 = vld [vmem:[%s3491_s4 + $0x90] sm:$0xff] }
  0xfe   : > { %2475 = vmatprep.subr.mxu1 %v803_v20 }
 0x120   : > { %v394_v21 = vpop.permute.xlu0 %393 }
 0x121   : > { %397 = vst.msk [vmem:[#allocation2 + $0x8] sm:$0xff] %vm396_vm3, %v394_v21  ;;  %v1125_v21 = vld [vmem:[%s3491_s4 + $0x28] sm:$0xff] }
 0x124   : > { %v400_v22 = vpop.permute.xlu1 %399 }
 0x125   : > { %403 = vst.msk [vmem:[#allocation2 + $0x10] sm:$0xff] %vm402_vm4, %v400_v22  ;;  %v1124_v22 = vld [vmem:[%s3491_s4 + $0x20] sm:$0xff] }
 0x128   : > { %v406_v23 = vpop.permute.xlu1 %405  ;;  %v2942_v24 = vld [vmem:[#allocation2 + $0x8] sm:$0xff]  ;;  %v418_v25 = vpop.permute.xlu0 %417 }
 0x129   : > { %409 = vst.msk [vmem:[#allocation2 + $0x18] sm:$0xff] %vm408_vm5, %v406_v23  ;;  %483 = vxpose.xlu1.b32.cont [2/8] (short) (narrow) %v2942_v24, 64  ;;  %2464 = vmatmul.mubr.msk.f32.vlgmr.msra.gmra.mxu1 %vm382_vm2, %v2942_v24  ;;  %v445_v26 = vsel %vm382_vm2, %v2942_v24, 0.0 }
 0x12a   : > { %421 = vst.msk [vmem:[#allocation2 + $0x28] sm:$0xff] %vm420_vm6, %v418_v25  ;;  %446 = vadd.xlane.f32.xlu0 %v445_v26  ;;  %2476 = vmatpush3.msra.mxu1 %v803_v20  ;;  %v1123_v25 = vld [vmem:[%s3491_s4 + $0x18] sm:$0xff]  ;;  %v1122_v26 = vld [vmem:[%s3491_s4 + $0x10] sm:$0xff] }
 0x12b   : > { %2477 = vmatprep.subr.mxu1 %v797_v18 }
 0x12c   : > { %v412_v27 = vpop.permute.xlu1 %411  ;;  %v2949_v28 = vld [vmem:[#allocation2 + $0x10] sm:$0xff]  ;;  %v430_v29 = vpop.permute.xlu0 %429  ;;  %2478 = vmatpush3.msra.mxu1 %v797_v18  ;;  %v1127_v18 = vld [vmem:[%s3491_s4 + $0x38] sm:$0xff] }
 0x12d   : > { %415 = vst.msk [vmem:[#allocation2 + $0x20] sm:$0xff] %vm414_vm7, %v412_v27  ;;  %484 = vxpose.xlu1.b32.cont [3/8] (short) (narrow) %v2949_v28, 64  ;;  %2466 = vmatprep.mubr.msk.f32.mxu1 %vm382_vm2, %v2949_v28  ;;  %v448_v30 = vsel %vm382_vm2, %v2949_v28, 0.0 }
 0x12e   : > { %433 = vst.msk [vmem:[#allocation2 + $0x38] sm:$0xff] %vm432_vm8, %v430_v29  ;;  %449 = vadd.xlane.f32.xlu0 %v448_v30  ;;  %2479 = vmatprep.subr.mxu1 %v2940_v15  ;;  %v1121_v30 = vld [vmem:[%s3491_s4 + $0x8] sm:$0xff] }
 0x12f   : > { %2480 = vmatpush3.msra.mxu1 %v2940_v15 }
 0x130   : > { %v2958_v31 = vld [vmem:[#allocation2 + $0x18] sm:$0xff]  ;;  %v424_v32 = vpop.permute.xlu1 %423  ;;  %2481 = vmatprep.subr.mxu1 %v2937_v13 }
 0x131   : > { %485 = vxpose.xlu1.b32.cont [4/8] (short) (narrow) %v2958_v31, 64  ;;  %2467 = vmatmul.mubr.msk.f32.gmra.mxu1 %vm382_vm2, %v2958_v31  ;;  %v451_v33 = vsel %vm382_vm2, %v2958_v31, 0.0  ;;  %427 = vst.msk [vmem:[#allocation2 + $0x30] sm:$0xff] %vm426_vm9, %v424_v32  ;;  %v2967_v34 = vld [vmem:[#allocation2 + $0x28] sm:$0xff]  ;;  %v1120_v32 = vld [vmem:[%s3491_s4] sm:$0xff] }
 0x132   : > { %452 = vadd.xlane.f32.xlu0 %v451_v33  ;;  %2482 = vmatpush3.msra.mxu1 %v2937_v13  ;;  %v457_v37 = vsel %vm382_vm2, %v2967_v34, 0.0 }
 0x133   : > { %2483 = vmatprep.subr.mxu1 %v2935_v11 }
 0x134   : > { %v2970_v35 = vld [vmem:[#allocation2 + $0x20] sm:$0xff]  ;;  %2484 = vmatpush3.msra.mxu1 %v2935_v11  ;;  %v1130_v11 = vld [vmem:[%s3491_s4 + $0x50] sm:$0xff] }
 0x135   : > { %486 = vxpose.xlu1.b32.cont [5/8] (short) (narrow) %v2970_v35, 64  ;;  %2469 = vmatprep.mubr.msk.f32.mxu1 %vm382_vm2, %v2970_v35  ;;  %v454_v36 = vsel %vm382_vm2, %v2970_v35, 0.0  ;;  %v2982_v38 = vld [vmem:[#allocation2 + $0x38] sm:$0xff] }
 0x136   : > { %2470 = vmatmul.mubr.msk.f32.gmra.mxu1 %vm382_vm2, %v2967_v34  ;;  %455 = vadd.xlane.f32.xlu0 %v454_v36 }
 0x137   : > { %2485 = vmatprep.subr.mxu1 %v2933_v9 }
 0x138   : > { %v2985_v39 = vld [vmem:[#allocation2 + $0x30] sm:$0xff]  ;;  %2486 = vmatpush3.msra.mxu1 %v2933_v9  ;;  %v1132_v9 = vld [vmem:[%s3491_s4 + $0x60] sm:$0xff] }
 0x139   : > { %487 = vxpose.xlu1.b32.cont [6/8] (short) (narrow) %v2967_v34, 64  ;;  %2472 = vmatprep.mubr.msk.f32.mxu1 %vm382_vm2, %v2985_v39  ;;  %v460_v40 = vsel %vm382_vm2, %v2985_v39, 0.0 }
 0x13a   : > { %458 = vadd.xlane.f32.xlu0 %v457_v37  ;;  %2473 = vmatmul.mubr.msk.f32.gmra.mxu1 %vm382_vm2, %v2982_v38 }
 0x13b   : > { %2487 = vmatprep.subr.mxu1 %v2931_v7 }
 0x13c   : > { %2488 = vmatpush3.msra.mxu1 %v2931_v7  ;;  %v1134_v7 = vld [vmem:[%s3491_s4 + $0x70] sm:$0xff] }
 0x13d   : > { %488 = vxpose.xlu1.b32.cont [7/8] (short) (narrow) %v2985_v39, 64  ;;  %2489 = vmatprep.subr.mxu1 %v2927_v1 }
 0x13e   : > { %2490 = vmatpush3.msra.mxu1 %v2927_v1  ;;  %v1137_v1 = vld [vmem:[%s3491_s4 + $0x88] sm:$0xff] }
 0x141   : > { %489 = vxpose.xlu1.b32.end [8/8] (short) (narrow) %v2982_v38, 64 }
 0x15f   : > { %2698 = vset.pattern.permute.xlu1 %v2768_v49 }
 0x168   : > { %461 = vadd.xlane.f32.xlu1 %v460_v40 }
 0x1a1   : > { %v3001_v41 = vpop.trf.xlu1 }
 0x1a2   : > { %2435 = vmatprep.mubr.msk.f32.mxu0 %vm382_vm2, %v3001_v41  ;;  %2491 = vmatprep.mubr.msk.f32.mxu1 %vm382_vm2, %v3001_v41 }
 0x1a5   : > { %v3007_v42 = vpop.trf.xlu1 }
 0x1a6   : > { %2436 = vmatmul.mubr.msk.f32.vlgmr.msra.gmra.mxu0 %vm382_vm2, %v3007_v42  ;;  %2492 = vmatmul.mubr.msk.f32.vlgmr.msra.gmra.mxu1 %vm382_vm2, %v3007_v42 }
 0x1a7   : > { %1153 = vmatpush1.msra.mxu0 %v1150_v51 }
 0x1a8   : > { %1154 = vmatprep.subr.mxu0 %v1149_v52  ;;  %v2036_v52 = vld [vmem:[%s301_s28] sm:$0xff] }
 0x1a9   : > { %v3013_v43 = vpop.trf.xlu1  ;;  %1155 = vmatpush1.msra.mxu0 %v1148_v53  ;;  %v463_v53 = vsel %vm382_vm2, %v2982_v38, 0.0 }
 0x1aa   : > { %2438 = vmatprep.mubr.msk.f32.mxu0 %vm382_vm2, %v3013_v43  ;;  %2494 = vmatprep.mubr.msk.f32.mxu1 %vm382_vm2, %v3013_v43 }
 0x1ab   : > { %1156 = vmatprep.subr.mxu0 %v1147_v54 }
 0x1ac   : > { %1157 = vmatpush1.msra.mxu0 %v1146_v55  ;;  %v444_v55 = vpop.xlane.xlu0 %443 }
 0x1ad   : > { %v3019_v44 = vpop.trf.xlu1  ;;  %1158 = vmatprep.subr.mxu0 %v1145_v56 }
 0x1ae   : > { %2439 = vmatmul.mubr.msk.f32.gmra.mxu0 %vm382_vm2, %v3019_v44  ;;  %2495 = vmatmul.mubr.msk.f32.gmra.mxu1 %vm382_vm2, %v3019_v44 }
 0x1af   : > { %1159 = vmatpush1.msra.mxu0 %v1144_v57 }
 0x1b0   : > { %1160 = vmatprep.subr.mxu0 %v1143_v58 }
 0x1b1   : > { %v3025_v45 = vpop.trf.xlu1  ;;  %1161 = vmatpush1.msra.mxu0 %v1142_v59 }
 0x1b2   : > { %2441 = vmatprep.mubr.msk.f32.mxu0 %vm382_vm2, %v3025_v45  ;;  %2497 = vmatprep.mubr.msk.f32.mxu1 %vm382_vm2, %v3025_v45 }
 0x1b3   : > { %1162 = vmatprep.subr.mxu0 %v1141_v60  ;;  %v447_v56 = vpop.xlane.xlu0 %446 }
 0x1b4   : > { %1163 = vmatpush1.msra.mxu0 %v1140_v61 }
 0x1b5   : > { %v3031_v46 = vpop.trf.xlu1  ;;  %1164 = vmatprep.subr.mxu0 %v1139_v62 }
 0x1b6   : > { %2442 = vmatmul.mubr.msk.f32.gmra.mxu0 %vm382_vm2, %v3031_v46  ;;  %2498 = vmatmul.mubr.msk.f32.gmra.mxu1 %vm382_vm2, %v3031_v46 }
 0x1b7   : > { %1165 = vmatpush1.msra.mxu0 %v1138_v0  ;;  %v450_v58 = vpop.xlane.xlu0 %449 }
 0x1b8   : > { %1166 = vmatprep.subr.mxu0 %v1137_v1 }
 0x1b9   : > { %v3037_v47 = vpop.trf.xlu1  ;;  %1167 = vmatpush1.msra.mxu0 %v1136_v2 }
 0x1ba   : > { %2444 = vmatprep.mubr.msk.f32.mxu0 %vm382_vm2, %v3037_v47  ;;  %2500 = vmatprep.mubr.msk.f32.mxu1 %vm382_vm2, %v3037_v47 }
 0x1bb   : > { %1168 = vmatprep.subr.mxu0 %v1135_v6  ;;  %v453_v61 = vpop.xlane.xlu0 %452 }
 0x1bc   : > { %1169 = vmatpush1.msra.mxu0 %v1134_v7 }
 0x1bd   : > { %v3043_v48 = vpop.trf.xlu1  ;;  %1170 = vmatprep.subr.mxu0 %v1133_v8 }
 0x1be   : > { %2445 = vmatmul.mubr.msk.f32.gmra.mxu0 %vm382_vm2, %v3043_v48  ;;  %2501 = vmatmul.mubr.msk.f32.gmra.mxu1 %vm382_vm2, %v3043_v48 }
 0x1bf   : > { %2519 = vmatprep.mubr.msk.f32.mxu1 %vm382_vm2, %v2923_v63  ;;  %1216 = vmatprep.mubr.f32.mxu0 %v2759_v3  ;;  %v456_v1 = vpop.xlane.xlu0 %455 }
 0x1c0   : > { %1171 = vmatpush1.msra.mxu0 %v1132_v9 }
 0x1c1   : > { %1172 = vmatprep.subr.mxu0 %v1131_v10 }
 0x1c2   : > { %1173 = vmatpush1.msra.mxu0 %v1130_v11 }
 0x1c3   : > { %1174 = vmatprep.subr.mxu0 %v1129_v16  ;;  %v459_v7 = vpop.xlane.xlu0 %458 }
 0x1c4   : > { %1175 = vmatpush1.msra.mxu0 %v1128_v17 }
 0x1c5   : > { %1176 = vmatprep.subr.mxu0 %v1127_v18 }
 0x1c6   : > { %1177 = vmatpush1.msra.mxu0 %v1126_v19 }
 0x1c7   : > { %1178 = vmatprep.subr.mxu0 %v1125_v21 }
 0x1c8   : > { %1179 = vmatpush1.msra.mxu0 %v1124_v22 }
 0x1c9   : > { %1180 = vmatprep.subr.mxu0 %v1123_v25 }
 0x1ca   : > { %1181 = vmatpush1.msra.mxu0 %v1122_v26 }
 0x1cb   : > { %1182 = vmatprep.subr.mxu0 %v1121_v30 }
 0x1cc   : > { %1183 = vmatpush1.msra.mxu0 %v1120_v32 }
 0x1e9   : > { %v2465_v57 = vpop.f32.mrf.mxu1 }
 0x1eb   : > { %v896_v59 = vpop.f32.mrf.mxu1 }
 0x1f1   : > { %v2468_v60 = vpop.f32.mrf.mxu1  ;;  %v462_v18 = vpop.xlane.xlu1 %461 }
 0x1f3   : > { %v906_v62 = vpop.f32.mrf.mxu1 }
 0x1f6   : > { %v3160_v0 = vpop.f32.mrf.mxu1 }
 0x1f8   : > { %v916_v2 = vpop.f32.mrf.mxu1 }
 0x1fa   : > { %v3162_v6 = vpop.f32.mrf.mxu1 }
 0x1fc   : > { %v3164_v8 = vpop.f32.mrf.mxu1 }
 0x266   : > { %v2437_v12 = vpop.f32.mrf.mxu0  ;;  %v2493_v9 = vpop.f32.mrf.mxu1 }
 0x267   : > { %2715 = vrcp.f32 %v2437_v12 }
 0x268   : > { %v604_v13 = vpop.f32.mrf.mxu0 }
 0x269   : > { %2717 = vrcp.f32 %v604_v13  ;;  %v1001_v13 = vpop.f32.mrf.mxu1 }
 0x26e   : > { %v2440_v14 = vpop.f32.mrf.mxu0  ;;  %v2496_v19 = vpop.f32.mrf.mxu1 }
 0x270   : > { %v614_v15 = vpop.f32.mrf.mxu0 }
 0x271   : > { %2719 = vrcp.f32 %v614_v15 }
 0x272   : > { %2721 = vrcp.f32 %v2440_v14 }
 0x274   : > { %v2716_v20 = vpop.eup %2715 }
 0x275   : > { %1063 = vperm.xlu0 %2697, %v2716_v20  }
 0x276   : > { %v2443_v23 = vpop.f32.mrf.mxu0  ;;  %v2718_v27 = vpop.eup %2717 }
 0x278   : > { %v624_v29 = vpop.f32.mrf.mxu0 }
 0x279   : > { %2723 = vrcp.f32 %v624_v29  ;;  %1058 = vperm.xlu0 %2697, %v2718_v27   ;;  %v1011_v27 = vpop.f32.mrf.mxu1 }
 0x27e   : > { %v2720_v33 = vpop.eup %2719  ;;  %v2446_v36 = vpop.f32.mrf.mxu0 }
 0x27f   : > { %1068 = vperm.xlu1 %2698, %v2720_v33   ;;  %v2722_v37 = vpop.eup %2721 }
 0x280   : > { %v634_v40 = vpop.f32.mrf.mxu0 }
 0x281   : > { %2725 = vrcp.f32 %v634_v40 }
 0x282   : > { %2727 = vrcp.f32 %v2446_v36 }
 0x283   : > { %1073 = vperm.xlu1 %2698, %v2722_v37   ;;  %2729 = vrcp.f32 %v2443_v23 }
 0x284   : > { %2731 = vrcp.f32 %v444_v55 }
 0x285   : > { %2733 = vrcp.f32 %v447_v56 }
 0x286   : > { %v2724_v49 = vpop.eup %2723  ;;  %2735 = vrcp.f32 %v450_v58 }
 0x287   : > { %1078 = vperm.xlu1 %2698, %v2724_v49   ;;  %2737 = vrcp.f32 %v453_v61  ;;  %v2499_v49 = vpop.f32.mrf.mxu1 }
 0x288   : > { %2739 = vrcp.f32 %v456_v1 }
 0x289   : > { %2741 = vrcp.f32 %v459_v7 }
 0x28a   : > { %2743 = vrcp.f32 %v462_v18 }
 0x28e   : > { %v2726_v50 = vpop.eup %2725 }
 0x28f   : > { %1088 = vperm.xlu1 %2698, %v2726_v50   ;;  %v2728_v51 = vpop.eup %2727 }
 0x290   : > { %v2730_v54 = vpop.eup %2729 }
 0x291   : > { %v3168_v11 = vpop.eup %2731 }
 0x292   : > { %v1040_v12 = vmul.f32 %v3168_v11, %v896_v59  ;;  %v3175_v17 = vpop.eup %2733 }
 0x293   : > { %1093 = vperm.xlu1 %2698, %v2728_v51   ;;  %v1041_v20 = vmul.f32 %v3175_v17, %v2465_v57  ;;  %v3178_v26 = vpop.eup %2735  ;;  %v1021_v57 = vpop.f32.mrf.mxu1 }
 0x294   : > { %v1048_v21 = vmax.f32 %v1040_v12, 0.0  ;;  %v1042_v32 = vmul.f32 %v3178_v26, %v906_v62  ;;  %v3185_v40 = vpop.eup %2737 }
 0x295   : > { %v1049_v30 = vmax.f32 %v1041_v20, 0.0  ;;  %v1043_v51 = vmul.f32 %v3185_v40, %v2468_v60  ;;  %v3192_v56 = vpop.eup %2739 }
 0x296   : > { %v1044_v61 = vmul.f32 %v3192_v56, %v916_v2  ;;  %v2502_v2 = vpop.f32.mrf.mxu1 }
 0x297   : > { %2039 = vperm.xlu1 %2698, %v2036_v52   ;;  %v1050_v52 = vmax.f32 %v1042_v32, 0.0  ;;  %v1051_v59 = vmax.f32 %v1043_v51, 0.0 }
 0x298   : > { %464 = vadd.xlane.f32.xlu0 %v463_v53 }
 0x2ae   : > { %1083 = vperm.xlu0 %2697, %v2730_v54  }
 0x2f0   : > { %v3166_v10 = vpop.permute.xlu0 %1063 }
 0x2f1   : > { %v1097_v15 = vmul.f32 %v2493_v9, %v3166_v10  ;;  %v1052_v9 = vmax.f32 %v1044_v61, 0.0  ;;  %v1541_v61 = vld [vmem:[%s3492_s5 + $0xd0] sm:$0xff] }
 0x2f3   : > { %v1105_v23 = vmax.f32 %v1097_v15, 0.0  ;;  %v3201_v15 = vpop.eup %2741 }
 0x2f4   : > { %v3171_v14 = vpop.permute.xlu0 %1058  ;;  %v3207_v20 = vpop.eup %2743 }
 0x2f5   : > { %v1096_v16 = vmul.f32 %v3171_v14, %v1001_v13  ;;  %v1113_v37 = vadd.f32 %v1105_v23, %v1049_v30 }
 0x2f7   : > { %v1104_v22 = vmax.f32 %v1096_v16, 0.0 }
 0x2f9   : > { %v1112_v25 = vadd.f32 %v1104_v22, %v1048_v21  ;;  %v1031_v21 = vpop.f32.mrf.mxu1 }
 0x2fa   : > { %v3180_v29 = vpop.permute.xlu1 %1068 }
 0x2fb   : > { %v1098_v33 = vmul.f32 %v3180_v29, %v1011_v27  ;;  %1217 = vmatmul.mubr.f32.vlgmr.msra.gmra.mxu0 %v1112_v25  ;;  %v1046_v25 = vmul.f32 %v3207_v20, %v3164_v8 }
 0x2fc   : > { %1222 = vmatprep.mubr.f32.mxu0 %v2759_v3 }
 0x2fd   : > { %v1106_v36 = vmax.f32 %v1098_v33, 0.0 }
 0x2fe   : > { %v3187_v50 = vpop.permute.xlu1 %1073 }
 0x2ff   : > { %v1099_v53 = vmul.f32 %v2496_v19, %v3187_v50  ;;  %1223 = vmatmul.mubr.f32.gmra.mxu0 %v1113_v37  ;;  %v1114_v55 = vadd.f32 %v1106_v36, %v1050_v52  ;;  %v1045_v19 = vmul.f32 %v3201_v15, %v3160_v0  ;;  %v1054_v0 = vmax.f32 %v1046_v25, 0.0 }
 0x300   : > { %1228 = vmatprep.mubr.f32.mxu0 %v2759_v3 }
 0x301   : > { %v1107_v54 = vmax.f32 %v1099_v53, 0.0  ;;  %v1053_v18 = vmax.f32 %v1045_v19, 0.0 }
 0x302   : > { %v3194_v58 = vpop.permute.xlu1 %1078 }
 0x303   : > { %v1100_v62 = vmul.f32 %v3194_v58, %v1021_v57  ;;  %1229 = vmatmul.mubr.f32.gmra.mxu0 %v1114_v55  ;;  %v1115_v1 = vadd.f32 %v1107_v54, %v1051_v59  ;;  %v1546_v54 = vld [vmem:[%s3492_s5 + $0xf8] sm:$0xff]  ;;  %v1544_v55 = vld [vmem:[%s3492_s5 + $0xe8] sm:$0xff]  ;;  %v1543_v57 = vld [vmem:[%s3492_s5 + $0xe0] sm:$0xff] }
 0x304   : > { %1234 = vmatprep.mubr.f32.mxu0 %v2759_v3  ;;  %1547 = vmatprep.subr.mxu0 %v1546_v54  ;;  %v1542_v59 = vld [vmem:[%s3492_s5 + $0xd8] sm:$0xff]  ;;  %v1528_v54 = vld [vmem:[%s3492_s5 + $0x68] sm:$0xff] }
 0x305   : > { %v1108_v60 = vmax.f32 %v1100_v62, 0.0  ;;  %v1540_v62 = vld [vmem:[%s3492_s5 + $0xc8] sm:$0xff] }
 0x307   : > { %1235 = vmatmul.mubr.f32.gmra.mxu0 %v1115_v1  ;;  %v1116_v12 = vadd.f32 %v1108_v60, %v1052_v9 }
 0x308   : > { %1240 = vmatprep.mubr.f32.mxu0 %v2759_v3 }
 0x30a   : > { %v3203_v16 = vpop.permute.xlu1 %1088 }
 0x30b   : > { %1241 = vmatmul.mubr.f32.gmra.mxu0 %v1116_v12  ;;  %v1102_v23 = vmul.f32 %v3203_v16, %v1031_v21 }
 0x30c   : > { %1246 = vmatprep.mubr.f32.mxu0 %v2759_v3 }
 0x30d   : > { %v1110_v32 = vmax.f32 %v1102_v23, 0.0 }
 0x30e   : > { %v3215_v30 = vpop.permute.xlu1 %1093 }
 0x30f   : > { %v1103_v37 = vmul.f32 %v2502_v2, %v3215_v30 }
 0x311   : > { %v1111_v53 = vmax.f32 %v1103_v37, 0.0  ;;  %v1534_v37 = vld [vmem:[%s3492_s5 + $0x98] sm:$0xff] }
 0x321   : > { %v465_v13 = vpop.xlane.xlu0 %464 }
 0x322   : > { %2745 = vrcp.f32 %v465_v13 }
 0x329   : > { %v3209_v22 = vpop.permute.xlu0 %1083 }
 0x32a   : > { %v1101_v7 = vmul.f32 %v2499_v49, %v3209_v22  ;;  %v1118_v49 = vadd.f32 %v1110_v32, %v1054_v0 }
 0x32c   : > { %v1109_v27 = vmax.f32 %v1101_v7, 0.0 }
 0x32e   : > { %v1117_v33 = vadd.f32 %v1109_v27, %v1053_v18 }
 0x32f   : > { %v3217_v36 = vpop.eup %2745 }
 0x330   : > { %1247 = vmatmul.mubr.f32.gmra.mxu0 %v1117_v33  ;;  %v1047_v51 = vmul.f32 %v3217_v36, %v3162_v6  ;;  %v1545_v6 = vld [vmem:[%s3492_s5 + $0xf0] sm:$0xff] }
 0x331   : > { %1252 = vmatprep.mubr.f32.mxu0 %v2759_v3  ;;  %1548 = vmatpush1.msra.mxu0 %v1545_v6  ;;  %v1527_v6 = vld [vmem:[%s3492_s5 + $0x60] sm:$0xff] }
 0x332   : > { %v1055_v52 = vmax.f32 %v1047_v51, 0.0  ;;  %1549 = vmatprep.subr.mxu0 %v1544_v55  ;;  %v1533_v51 = vld [vmem:[%s3492_s5 + $0x90] sm:$0xff]  ;;  %v1526_v55 = vld [vmem:[%s3492_s5 + $0x58] sm:$0xff] }
 0x333   : > { %1550 = vmatpush1.msra.mxu0 %v1543_v57  ;;  %v1525_v57 = vld [vmem:[%s3492_s5 + $0x50] sm:$0xff] }
 0x334   : > { %1253 = vmatmul.mubr.f32.gmra.mxu0 %v1118_v49  ;;  %v1119_v8 = vadd.f32 %v1111_v53, %v1055_v52  ;;  %1551 = vmatprep.subr.mxu0 %v1542_v59  ;;  %v1532_v49 = vld [vmem:[%s3492_s5 + $0x88] sm:$0xff]  ;;  %v1531_v52 = vld [vmem:[%s3492_s5 + $0x80] sm:$0xff]  ;;  %v1530_v53 = vld [vmem:[%s3492_s5 + $0x78] sm:$0xff] }
 0x335   : > { %1258 = vmatprep.mubr.f32.mxu0 %v2759_v3  ;;  %1552 = vmatpush1.msra.mxu0 %v1541_v61  ;;  %v1524_v59 = vld [vmem:[%s3492_s5 + $0x48] sm:$0xff]  ;;  %v1523_v61 = vld [vmem:[%s3492_s5 + $0x40] sm:$0xff] }
 0x336   : > { %1553 = vmatprep.subr.mxu0 %v1540_v62  ;;  %v1522_v62 = vld [vmem:[%s3492_s5 + $0x38] sm:$0xff] }
 0x338   : > { %1259 = vmatmul.mubr.f32.gmra.mxu0 %v1119_v8  ;;  %v1529_v8 = vld [vmem:[%s3492_s5 + $0x70] sm:$0xff] }
 0x339   : > { %1611 = vmatprep.mubr.f32.mxu0 %v2759_v3 }
 0x3bb   : > { %v1218_v60 = vpop.f32.mrf.mxu0 }
 0x3bd   : > { %v1220_v1 = vpop.f32.mrf.mxu0 }
 0x3bf   : > { %v1224_v9 = vpop.f32.mrf.mxu0 }
 0x3c1   : > { %v1226_v12 = vpop.f32.mrf.mxu0 }
 0x3c3   : > { %v1230_v13 = vpop.f32.mrf.mxu0 }
 0x3c5   : > { %v1232_v2 = vpop.f32.mrf.mxu0 }
 0x3c7   : > { %v1236_v19 = vpop.f32.mrf.mxu0 }
 0x3c9   : > { %v1238_v21 = vpop.f32.mrf.mxu0 }
 0x3cb   : > { %v1242_v23 = vpop.f32.mrf.mxu0 }
 0x3cd   : > { %v1244_v7 = vpop.f32.mrf.mxu0 }
 0x3f0   : > { %v1248_v18 = vpop.f32.mrf.mxu0 }
 0x3f2   : > { %v1250_v25 = vpop.f32.mrf.mxu0 }
 0x3f4   : > { %v1254_v27 = vpop.f32.mrf.mxu0 }
 0x3f6   : > { %v1256_v32 = vpop.f32.mrf.mxu0 }
 0x3f8   : > { %v1260_v33 = vpop.f32.mrf.mxu0 }
 0x3f9   : > { %2503 = vmatprep.subr.mxu1 %v1260_v33 }
 0x3fa   : > { %2504 = vmatpush3.msra.mxu1 %v1260_v33  ;;  %v1262_v0 = vpop.f32.mrf.mxu0 }
 0x3fb   : > { %2505 = vmatprep.subr.mxu1 %v1254_v27 }
 0x3fc   : > { %2506 = vmatpush3.msra.mxu1 %v1254_v27 }
 0x3fd   : > { %2507 = vmatprep.subr.mxu1 %v1248_v18 }
 0x3fe   : > { %2508 = vmatpush3.msra.mxu1 %v1248_v18 }
 0x3ff   : > { %2509 = vmatprep.subr.mxu1 %v1242_v23 }
 0x400   : > { %2510 = vmatpush3.msra.mxu1 %v1242_v23 }
 0x401   : > { %2511 = vmatprep.subr.mxu1 %v1236_v19 }
 0x402   : > { %2512 = vmatpush3.msra.mxu1 %v1236_v19  ;;  %v1515_v19 = vld [vmem:[%s3492_s5] sm:$0xff] }
 0x403   : > { %2513 = vmatprep.subr.mxu1 %v1230_v13 }
 0x404   : > { %2514 = vmatpush3.msra.mxu1 %v1230_v13  ;;  %v1517_v13 = vld [vmem:[%s3492_s5 + $0x10] sm:$0xff] }
 0x405   : > { %2515 = vmatprep.subr.mxu1 %v1224_v9 }
 0x406   : > { %2516 = vmatpush3.msra.mxu1 %v1224_v9  ;;  %v1519_v9 = vld [vmem:[%s3492_s5 + $0x20] sm:$0xff] }
 0x407   : > { %2517 = vmatprep.subr.mxu1 %v1218_v60 }
 0x408   : > { %2518 = vmatpush3.msra.mxu1 %v1218_v60  ;;  %v1521_v60 = vld [vmem:[%s3492_s5 + $0x30] sm:$0xff] }
 0x409   : > { %2520 = vmatmul.mubr.msk.f32.vlgmr.msra.gmra.mxu1 %vm382_vm2, %v2942_v24  ;;  %2531 = vmatprep.subr.mxu1 %v1262_v0  ;;  %v1539_v24 = vld [vmem:[%s3492_s5 + $0xc0] sm:$0xff] }
 0x40a   : > { %2522 = vmatprep.mubr.msk.f32.mxu1 %vm382_vm2, %v2949_v28  ;;  %2532 = vmatpush3.msra.mxu1 %v1262_v0  ;;  %v1538_v28 = vld [vmem:[%s3492_s5 + $0xb8] sm:$0xff] }
 0x40b   : > { %2533 = vmatprep.subr.mxu1 %v1256_v32  ;;  %1554 = vmatpush1.msra.mxu0 %v1539_v24 }
 0x40c   : > { %2534 = vmatpush3.msra.mxu1 %v1256_v32  ;;  %1555 = vmatprep.subr.mxu0 %v1538_v28 }
 0x40d   : > { %2523 = vmatmul.mubr.msk.f32.gmra.mxu1 %vm382_vm2, %v2958_v31  ;;  %2535 = vmatprep.subr.mxu1 %v1250_v25  ;;  %v1537_v31 = vld [vmem:[%s3492_s5 + $0xb0] sm:$0xff] }
 0x40e   : > { %2525 = vmatprep.mubr.msk.f32.mxu1 %vm382_vm2, %v2970_v35  ;;  %2536 = vmatpush3.msra.mxu1 %v1250_v25 }
 0x40f   : > { %2537 = vmatprep.subr.mxu1 %v1244_v7  ;;  %1556 = vmatpush1.msra.mxu0 %v1537_v31 }
 0x410   : > { %2538 = vmatpush3.msra.mxu1 %v1244_v7 }
 0x411   : > { %2526 = vmatmul.mubr.msk.f32.gmra.mxu1 %vm382_vm2, %v2967_v34  ;;  %2539 = vmatprep.subr.mxu1 %v1238_v21  ;;  %v1536_v34 = vld [vmem:[%s3492_s5 + $0xa8] sm:$0xff] }
 0x412   : > { %2528 = vmatprep.mubr.msk.f32.mxu1 %vm382_vm2, %v2985_v39  ;;  %2540 = vmatpush3.msra.mxu1 %v1238_v21 }
 0x413   : > { %2541 = vmatprep.subr.mxu1 %v1232_v2  ;;  %1557 = vmatprep.subr.mxu0 %v1536_v34 }
 0x414   : > { %2542 = vmatpush3.msra.mxu1 %v1232_v2  ;;  %v1516_v2 = vld [vmem:[%s3492_s5 + $0x8] sm:$0xff] }
 0x415   : > { %2529 = vmatmul.mubr.msk.f32.gmra.mxu1 %vm382_vm2, %v2982_v38  ;;  %2543 = vmatprep.subr.mxu1 %v1226_v12 }
 0x416   : > { %2544 = vmatpush3.msra.mxu1 %v1226_v12  ;;  %2547 = vmatprep.mubr.msk.f32.mxu1 %vm382_vm2, %v3001_v41  ;;  %v1518_v12 = vld [vmem:[%s3492_s5 + $0x18] sm:$0xff] }
 0x417   : > { %2545 = vmatprep.subr.mxu1 %v1220_v1 }
 0x418   : > { %2546 = vmatpush3.msra.mxu1 %v1220_v1  ;;  %v1520_v1 = vld [vmem:[%s3492_s5 + $0x28] sm:$0xff] }
 0x419   : > { %2548 = vmatmul.mubr.msk.f32.vlgmr.msra.gmra.mxu1 %vm382_vm2, %v3007_v42 }
 0x41a   : > { %2550 = vmatprep.mubr.msk.f32.mxu1 %vm382_vm2, %v3013_v43 }
 0x41d   : > { %2551 = vmatmul.mubr.msk.f32.gmra.mxu1 %vm382_vm2, %v3019_v44 }
 0x41e   : > { %2553 = vmatprep.mubr.msk.f32.mxu1 %vm382_vm2, %v3025_v45 }
 0x421   : > { %2554 = vmatmul.mubr.msk.f32.gmra.mxu1 %vm382_vm2, %v3031_v46 }
 0x422   : > { %2556 = vmatprep.mubr.msk.f32.mxu1 %vm382_vm2, %v3037_v47 }
 0x425   : > { %2557 = vmatmul.mubr.msk.f32.gmra.mxu1 %vm382_vm2, %v3043_v48 }
 0x426   : > { %2575 = vmatprep.mubr.msk.f32.mxu1 %vm382_vm2, %v2923_v63  ;;  %v1535_v63 = vld [vmem:[%s3492_s5 + $0xa0] sm:$0xff] }
 0x427   : > { %1558 = vmatpush1.msra.mxu0 %v1535_v63 }
 0x428   : > { %1559 = vmatprep.subr.mxu0 %v1534_v37 }
 0x429   : > { %1560 = vmatpush1.msra.mxu0 %v1533_v51 }
 0x42a   : > { %1561 = vmatprep.subr.mxu0 %v1532_v49 }
 0x42b   : > { %1562 = vmatpush1.msra.mxu0 %v1531_v52 }
 0x42c   : > { %1563 = vmatprep.subr.mxu0 %v1530_v53 }
 0x42d   : > { %1564 = vmatpush1.msra.mxu0 %v1529_v8 }
 0x42e   : > { %1565 = vmatprep.subr.mxu0 %v1528_v54 }
 0x42f   : > { %1566 = vmatpush1.msra.mxu0 %v1527_v6 }
 0x430   : > { %1567 = vmatprep.subr.mxu0 %v1526_v55 }
 0x431   : > { %1568 = vmatpush1.msra.mxu0 %v1525_v57 }
 0x432   : > { %1569 = vmatprep.subr.mxu0 %v1524_v59 }
 0x433   : > { %1570 = vmatpush1.msra.mxu0 %v1523_v61 }
 0x434   : > { %1571 = vmatprep.subr.mxu0 %v1522_v62 }
 0x435   : > { %1572 = vmatpush1.msra.mxu0 %v1521_v60 }
 0x436   : > { %1573 = vmatprep.subr.mxu0 %v1520_v1 }
 0x437   : > { %1574 = vmatpush1.msra.mxu0 %v1519_v9 }
 0x438   : > { %1575 = vmatprep.subr.mxu0 %v1518_v12 }
 0x439   : > { %1576 = vmatpush1.msra.mxu0 %v1517_v13 }
 0x43a   : > { %1577 = vmatprep.subr.mxu0 %v1516_v2 }
 0x43b   : > { %1578 = vmatpush1.msra.mxu0 %v1515_v19 }
 0x4c9   : > { %v2521_v21 = vpop.f32.mrf.mxu1 }
 0x4ca   : > { %v1476_v37 = vmul.f32 %v3175_v17, %v2521_v21 }
 0x4cb   : > { %v1331_v23 = vpop.f32.mrf.mxu1 }
 0x4cc   : > { %v1475_v24 = vmul.f32 %v3168_v11, %v1331_v23  ;;  %v1484_v55 = vmax.f32 %v1476_v37, 0.0 }
 0x4cd   : > { %v2524_v7 = vpop.f32.mrf.mxu1 }
 0x4ce   : > { %v1483_v51 = vmax.f32 %v1475_v24, 0.0  ;;  %v1478_v1 = vmul.f32 %v3185_v40, %v2524_v7 }
 0x4cf   : > { %v1341_v18 = vpop.f32.mrf.mxu1 }
 0x4d0   : > { %v1477_v57 = vmul.f32 %v3178_v26, %v1341_v18  ;;  %v1486_v21 = vmax.f32 %v1478_v1, 0.0 }
 0x4d1   : > { %v2527_v25 = vpop.f32.mrf.mxu1 }
 0x4d2   : > { %v1485_v9 = vmax.f32 %v1477_v57, 0.0  ;;  %v1925_v57 = vld [vmem:[%s3493_s6 + $0x78] sm:$0xff] }
 0x4d3   : > { %v1351_v27 = vpop.f32.mrf.mxu1  ;;  %2615 = vmatprep.subr.mxu0 %v1925_v57 }
 0x4d4   : > { %v1479_v23 = vmul.f32 %v3192_v56, %v1351_v27 }
 0x4d5   : > { %v2530_v32 = vpop.f32.mrf.mxu1 }
 0x4d7   : > { %v1361_v33 = vpop.f32.mrf.mxu1 }
 0x4d8   : > { %v1481_v27 = vmul.f32 %v3207_v20, %v1361_v33 }
 0x4d9   : > { %v2549_v0 = vpop.f32.mrf.mxu1 }
 0x4da   : > { %v1492_v31 = vmul.f32 %v2549_v0, %v3166_v10 }
 0x4db   : > { %v1436_v28 = vpop.f32.mrf.mxu1 }
 0x4dc   : > { %v1491_v34 = vmul.f32 %v1436_v28, %v3171_v14  ;;  %v1500_v53 = vmax.f32 %v1492_v31, 0.0  ;;  %v1480_v28 = vmul.f32 %v3201_v15, %v2527_v25  ;;  %v1487_v31 = vmax.f32 %v1479_v23, 0.0 }
 0x4dd   : > { %v2552_v63 = vpop.f32.mrf.mxu1  ;;  %v1482_v25 = vmul.f32 %v3217_v36, %v2530_v32  ;;  %v1924_v32 = vld [vmem:[%s3493_s6 + $0x70] sm:$0xff] }
 0x4de   : > { %v1499_v49 = vmax.f32 %v1491_v34, 0.0  ;;  %v1508_v59 = vadd.f32 %v1500_v53, %v1484_v55  ;;  %v1494_v61 = vmul.f32 %v2552_v63, %v3187_v50 }
 0x4df   : > { %v1446_v52 = vpop.f32.mrf.mxu1  ;;  %v1490_v55 = vmax.f32 %v1482_v25, 0.0 }
 0x4e0   : > { %v1507_v8 = vadd.f32 %v1499_v49, %v1483_v51  ;;  %v1493_v54 = vmul.f32 %v1446_v52, %v3180_v29  ;;  %v1502_v12 = vmax.f32 %v1494_v61, 0.0  ;;  %v1488_v51 = vmax.f32 %v1480_v28, 0.0 }
 0x4e1   : > { %v2555_v6 = vpop.f32.mrf.mxu1 }
 0x4e2   : > { %1612 = vmatmul.mubr.f32.vlgmr.msra.gmra.mxu0 %v1507_v8  ;;  %v1501_v62 = vmax.f32 %v1493_v54, 0.0  ;;  %v1510_v18 = vadd.f32 %v1502_v12, %v1486_v21  ;;  %v1496_v0 = vmul.f32 %v2555_v6, %v3209_v22  ;;  %v1489_v8 = vmax.f32 %v1481_v27, 0.0  ;;  %v1910_v27 = vld [vmem:[%s3493_s6] sm:$0xff] }
 0x4e3   : > { %1617 = vmatprep.mubr.f32.mxu0 %v2759_v3  ;;  %v1456_v60 = vpop.f32.mrf.mxu1  ;;  %2616 = vmatpush3.msra.mxu0 %v1925_v57 }
 0x4e4   : > { %v1509_v13 = vadd.f32 %v1501_v62, %v1485_v9  ;;  %v1495_v2 = vmul.f32 %v1456_v60, %v3194_v58  ;;  %v1504_v34 = vmax.f32 %v1496_v0, 0.0  ;;  %2617 = vmatprep.subr.mxu0 %v1924_v32 }
 0x4e5   : > { %v2558_v19 = vpop.f32.mrf.mxu1  ;;  %2618 = vmatpush3.msra.mxu0 %v1924_v32 }
 0x4e6   : > { %1618 = vmatmul.mubr.f32.gmra.mxu0 %v1508_v59  ;;  %v1503_v24 = vmax.f32 %v1495_v2, 0.0  ;;  %v1512_v49 = vadd.f32 %v1504_v34, %v1488_v51  ;;  %v1498_v52 = vmul.f32 %v2558_v19, %v3215_v30  ;;  %v1923_v59 = vld [vmem:[%s3493_s6 + $0x68] sm:$0xff]  ;;  %v2748_v34 = vld [vmem:[#allocation2 + $0x10] sm:$0xff] }
 0x4e7   : > { %1623 = vmatprep.mubr.f32.mxu0 %v2759_v3  ;;  %v1466_v7 = vpop.f32.mrf.mxu1  ;;  %2619 = vmatprep.subr.mxu0 %v1923_v59  ;;  %v1911_v51 = vld [vmem:[%s3493_s6 + $0x8] sm:$0xff] }
 0x4e8   : > { %v1511_v63 = vadd.f32 %v1503_v24, %v1487_v31  ;;  %v1497_v37 = vmul.f32 %v1466_v7, %v3203_v16  ;;  %v1506_v54 = vmax.f32 %v1498_v52, 0.0  ;;  %2620 = vmatpush3.msra.mxu0 %v1923_v59  ;;  %v2747_v31 = vld [vmem:[#allocation2 + $0x8] sm:$0xff] }
 0x4ea   : > { %1624 = vmatmul.mubr.f32.gmra.mxu0 %v1509_v13  ;;  %v1505_v53 = vmax.f32 %v1497_v37, 0.0  ;;  %v1514_v33 = vadd.f32 %v1506_v54, %v1490_v55  ;;  %v2750_v37 = vld [vmem:[#allocation2 + $0x28] sm:$0xff] }
 0x4eb   : > { %1629 = vmatprep.mubr.f32.mxu0 %v2759_v3 }
 0x4ec   : > { %v1513_v6 = vadd.f32 %v1505_v53, %v1489_v8 }
 0x4ee   : > { %1630 = vmatmul.mubr.f32.gmra.mxu0 %v1510_v18 }
 0x4ef   : > { %1635 = vmatprep.mubr.f32.mxu0 %v2759_v3 }
 0x4f2   : > { %1636 = vmatmul.mubr.f32.gmra.mxu0 %v1511_v63  ;;  %v2749_v63 = vld [vmem:[#allocation2 + $0x18] sm:$0xff] }
 0x4f3   : > { %1641 = vmatprep.mubr.f32.mxu0 %v2759_v3 }
 0x4f6   : > { %1642 = vmatmul.mubr.f32.gmra.mxu0 %v1512_v49 }
 0x4f7   : > { %1647 = vmatprep.mubr.f32.mxu0 %v2759_v3 }
 0x4fa   : > { %1648 = vmatmul.mubr.f32.gmra.mxu0 %v1513_v6 }
 0x4fb   : > { %1653 = vmatprep.mubr.f32.mxu0 %v2759_v3 }
 0x4fe   : > { %1654 = vmatmul.mubr.f32.gmra.mxu0 %v1514_v33 }
 0x5a2   : > { %v1613_v61 = vpop.f32.mrf.mxu0 }
 0x5a4   : > { %v1615_v62 = vpop.f32.mrf.mxu0 }
 0x5a6   : > { %v1619_v60 = vpop.f32.mrf.mxu0 }
 0x5a8   : > { %v1621_v1 = vpop.f32.mrf.mxu0 }
 0x5aa   : > { %v1625_v9 = vpop.f32.mrf.mxu0 }
 0x5ac   : > { %v1627_v12 = vpop.f32.mrf.mxu0 }
 0x5ae   : > { %v1631_v13 = vpop.f32.mrf.mxu0 }
 0x5b0   : > { %v1633_v2 = vpop.f32.mrf.mxu0 }
 0x5b2   : > { %v1637_v19 = vpop.f32.mrf.mxu0 }
 0x5b4   : > { %v1639_v21 = vpop.f32.mrf.mxu0 }
 0x5b6   : > { %v1643_v23 = vpop.f32.mrf.mxu0 }
 0x5b8   : > { %v1645_v18 = vpop.f32.mrf.mxu0 }
 0x5ba   : > { %v1649_v0 = vpop.f32.mrf.mxu0 }
 0x5bc   : > { %v1651_v24 = vpop.f32.mrf.mxu0 }
 0x5be   : > { %v1655_v7 = vpop.f32.mrf.mxu0 }
 0x5bf   : > { %2559 = vmatprep.subr.mxu1 %v1655_v7 }
 0x5c0   : > { %2560 = vmatpush3.msra.mxu1 %v1655_v7  ;;  %v1657_v28 = vpop.f32.mrf.mxu0 }
 0x5c1   : > { %2561 = vmatprep.subr.mxu1 %v1649_v0 }
 0x5c2   : > { %2562 = vmatpush3.msra.mxu1 %v1649_v0 }
 0x5c3   : > { %2563 = vmatprep.subr.mxu1 %v1643_v23 }
 0x5c4   : > { %2564 = vmatpush3.msra.mxu1 %v1643_v23 }
 0x5c5   : > { %2565 = vmatprep.subr.mxu1 %v1637_v19 }
 0x5c6   : > { %2566 = vmatpush3.msra.mxu1 %v1637_v19 }
 0x5c7   : > { %2567 = vmatprep.subr.mxu1 %v1631_v13 }
 0x5c8   : > { %2568 = vmatpush3.msra.mxu1 %v1631_v13 }
 0x5c9   : > { %2569 = vmatprep.subr.mxu1 %v1625_v9 }
 0x5ca   : > { %2570 = vmatpush3.msra.mxu1 %v1625_v9 }
 0x5cb   : > { %2571 = vmatprep.subr.mxu1 %v1619_v60 }
 0x5cc   : > { %2572 = vmatpush3.msra.mxu1 %v1619_v60 }
 0x5cd   : > { %2573 = vmatprep.subr.mxu1 %v1613_v61 }
 0x5ce   : > { %2574 = vmatpush3.msra.mxu1 %v1613_v61 }
 0x5cf   : > { %2576 = vmatmul.mubr.msk.f32.vlgmr.msra.gmra.mxu1 %vm382_vm2, %v2747_v31  ;;  %2587 = vmatprep.subr.mxu1 %v1657_v28 }
 0x5d0   : > { %2578 = vmatprep.mubr.msk.f32.mxu1 %vm382_vm2, %v2748_v34  ;;  %2588 = vmatpush3.msra.mxu1 %v1657_v28 }
 0x5d1   : > { %2589 = vmatprep.subr.mxu1 %v1651_v24 }
 0x5d2   : > { %2590 = vmatpush3.msra.mxu1 %v1651_v24 }
 0x5d3   : > { %2579 = vmatmul.mubr.msk.f32.gmra.mxu1 %vm382_vm2, %v2749_v63  ;;  %2591 = vmatprep.subr.mxu1 %v1645_v18 }
 0x5d4   : > { %2581 = vmatprep.mubr.msk.f32.mxu1 %vm382_vm2, %v2970_v35  ;;  %2592 = vmatpush3.msra.mxu1 %v1645_v18  ;;  %v1922_v35 = vld [vmem:[%s3493_s6 + $0x60] sm:$0xff] }
 0x5d5   : > { %2593 = vmatprep.subr.mxu1 %v1639_v21  ;;  %2621 = vmatprep.subr.mxu0 %v1922_v35 }
 0x5d6   : > { %2594 = vmatpush3.msra.mxu1 %v1639_v21  ;;  %2622 = vmatpush3.msra.mxu0 %v1922_v35 }
 0x5d7   : > { %2582 = vmatmul.mubr.msk.f32.gmra.mxu1 %vm382_vm2, %v2750_v37  ;;  %2595 = vmatprep.subr.mxu1 %v1633_v2 }
 0x5d8   : > { %2584 = vmatprep.mubr.msk.f32.mxu1 %vm382_vm2, %v2985_v39  ;;  %2596 = vmatpush3.msra.mxu1 %v1633_v2  ;;  %v1920_v39 = vld [vmem:[%s3493_s6 + $0x50] sm:$0xff] }
 0x5d9   : > { %2597 = vmatprep.subr.mxu1 %v1627_v12 }
 0x5da   : > { %2598 = vmatpush3.msra.mxu1 %v1627_v12 }
 0x5db   : > { %2585 = vmatmul.mubr.msk.f32.gmra.mxu1 %vm382_vm2, %v2982_v38  ;;  %2599 = vmatprep.subr.mxu1 %v1621_v1  ;;  %v1921_v38 = vld [vmem:[%s3493_s6 + $0x58] sm:$0xff] }
 0x5dc   : > { %2600 = vmatpush3.msra.mxu1 %v1621_v1  ;;  %2603 = vmatprep.mubr.msk.f32.mxu1 %vm382_vm2, %v3001_v41  ;;  %v1919_v41 = vld [vmem:[%s3493_s6 + $0x48] sm:$0xff] }
 0x5dd   : > { %2601 = vmatprep.subr.mxu1 %v1615_v62  ;;  %2623 = vmatprep.subr.mxu0 %v1921_v38 }
 0x5de   : > { %2602 = vmatpush3.msra.mxu1 %v1615_v62  ;;  %2624 = vmatpush3.msra.mxu0 %v1921_v38 }
 0x5df   : > { %2604 = vmatmul.mubr.msk.f32.vlgmr.msra.gmra.mxu1 %vm382_vm2, %v3007_v42  ;;  %2625 = vmatprep.subr.mxu0 %v1920_v39  ;;  %v1918_v42 = vld [vmem:[%s3493_s6 + $0x40] sm:$0xff] }
 0x5e0   : > { %2606 = vmatprep.mubr.msk.f32.mxu1 %vm382_vm2, %v3013_v43  ;;  %2626 = vmatpush3.msra.mxu0 %v1920_v39  ;;  %v1917_v43 = vld [vmem:[%s3493_s6 + $0x38] sm:$0xff] }
 0x5e1   : > { %2627 = vmatprep.subr.mxu0 %v1919_v41 }
 0x5e2   : > { %2628 = vmatpush3.msra.mxu0 %v1919_v41 }
 0x5e3   : > { %2607 = vmatmul.mubr.msk.f32.gmra.mxu1 %vm382_vm2, %v3019_v44  ;;  %2629 = vmatprep.subr.mxu0 %v1918_v42  ;;  %v1916_v44 = vld [vmem:[%s3493_s6 + $0x30] sm:$0xff] }
 0x5e4   : > { %2609 = vmatprep.mubr.msk.f32.mxu1 %vm382_vm2, %v3025_v45  ;;  %2630 = vmatpush3.msra.mxu0 %v1918_v42  ;;  %v1915_v45 = vld [vmem:[%s3493_s6 + $0x28] sm:$0xff] }
 0x5e5   : > { %2631 = vmatprep.subr.mxu0 %v1917_v43 }
 0x5e6   : > { %2632 = vmatpush3.msra.mxu0 %v1917_v43 }
 0x5e7   : > { %2610 = vmatmul.mubr.msk.f32.gmra.mxu1 %vm382_vm2, %v3031_v46  ;;  %2633 = vmatprep.subr.mxu0 %v1916_v44  ;;  %v1914_v46 = vld [vmem:[%s3493_s6 + $0x20] sm:$0xff] }
 0x5e8   : > { %2612 = vmatprep.mubr.msk.f32.mxu1 %vm382_vm2, %v3037_v47  ;;  %2634 = vmatpush3.msra.mxu0 %v1916_v44  ;;  %v1913_v47 = vld [vmem:[%s3493_s6 + $0x18] sm:$0xff] }
 0x5e9   : > { %2635 = vmatprep.subr.mxu0 %v1915_v45 }
 0x5ea   : > { %2636 = vmatpush3.msra.mxu0 %v1915_v45 }
 0x5eb   : > { %2613 = vmatmul.mubr.msk.f32.gmra.mxu1 %vm382_vm2, %v3043_v48  ;;  %2637 = vmatprep.subr.mxu0 %v1914_v46  ;;  %v1912_v48 = vld [vmem:[%s3493_s6 + $0x10] sm:$0xff] }
 0x5ec   : > { %2638 = vmatpush3.msra.mxu0 %v1914_v46 }
 0x5ed   : > { %2639 = vmatprep.subr.mxu0 %v1913_v47 }
 0x5ee   : > { %2640 = vmatpush3.msra.mxu0 %v1913_v47 }
 0x5ef   : > { %2641 = vmatprep.subr.mxu0 %v1912_v48 }
 0x5f0   : > { %2642 = vmatpush3.msra.mxu0 %v1912_v48 }
 0x5f1   : > { %2643 = vmatprep.subr.mxu0 %v1911_v51 }
 0x5f2   : > { %2644 = vmatpush3.msra.mxu0 %v1911_v51 }
 0x5f3   : > { %2645 = vmatprep.subr.mxu0 %v1910_v27 }
 0x5f4   : > { %2646 = vmatpush3.msra.mxu0 %v1910_v27 }
 0x5f5   : > { %2659 = vmatprep.subr.mxu0 %v2759_v3 }
 0x68f   : > { %v2577_v49 = vpop.f32.mrf.mxu1 }
 0x690   : > { %v1871_v59 = vmul.f32 %v3175_v17, %v2577_v49 }
 0x691   : > { %v1726_v52 = vpop.f32.mrf.mxu1 }
 0x692   : > { %v1870_v57 = vmul.f32 %v3168_v11, %v1726_v52  ;;  %v1879_v19 = vmax.f32 %v1871_v59, 0.0 }
 0x693   : > { %v2580_v53 = vpop.f32.mrf.mxu1 }
 0x694   : > { %v1878_v9 = vmax.f32 %v1870_v57, 0.0  ;;  %v1873_v21 = vmul.f32 %v3185_v40, %v2580_v53  ;;  %v2031_v53 = vmul.u32 8, %v2828_v4  ;;  %v2040_v4 = vpop.permute.xlu1 %2039 }
 0x695   : > { %v1736_v25 = vpop.f32.mrf.mxu1 }
 0x696   : > { %v1872_v12 = vmul.f32 %v3178_v26, %v1736_v25  ;;  %v1881_v26 = vmax.f32 %v1873_v21, 0.0  ;;  %vm2032_vm11 = vcmp.ge.s32.totalorder %v2830_v5, %v2031_v53 }
 0x697   : > { %v2583_v8 = vpop.f32.mrf.mxu1 }
 0x698   : > { %v1880_v24 = vmax.f32 %v1872_v12, 0.0 }
 0x699   : > { %v1746_v54 = vpop.f32.mrf.mxu1 }
 0x69b   : > { %v2586_v6 = vpop.f32.mrf.mxu1 }
 0x69c   : > { %v1877_v41 = vmul.f32 %v3217_v36, %v2586_v6 }
 0x69d   : > { %v1756_v55 = vpop.f32.mrf.mxu1 }
 0x69e   : > { %v1876_v38 = vmul.f32 %v3207_v20, %v1756_v55  ;;  %v1885_v47 = vmax.f32 %v1877_v41, 0.0 }
 0x69f   : > { %v2605_v33 = vpop.f32.mrf.mxu1 }
 0x6a0   : > { %v1887_v32 = vmul.f32 %v2605_v33, %v3166_v10  ;;  %v1884_v45 = vmax.f32 %v1876_v38, 0.0 }
 0x6a1   : > { %v1831_v61 = vpop.f32.mrf.mxu1 }
 0x6a2   : > { %v1886_v62 = vmul.f32 %v1831_v61, %v3171_v14  ;;  %v1895_v60 = vmax.f32 %v1887_v32, 0.0  ;;  %v1874_v14 = vmul.f32 %v3192_v56, %v1746_v54 }
 0x6a3   : > { %v2608_v1 = vpop.f32.mrf.mxu1 }
 0x6a4   : > { %v1894_v13 = vmax.f32 %v1886_v62, 0.0  ;;  %v1889_v2 = vmul.f32 %v2608_v1, %v3187_v50  ;;  %v1903_v18 = vadd.f32 %v1895_v60, %v1879_v19  ;;  %v1875_v50 = vmul.f32 %v3201_v15, %v2583_v8 }
 0x6a5   : > { %v1841_v23 = vpop.f32.mrf.mxu1  ;;  %v1882_v35 = vmax.f32 %v1874_v14, 0.0  ;;  %v2033_v8 = vadd.s32 8, %v2031_v53 }
 0x6a6   : > { %v1902_v11 = vadd.f32 %v1894_v13, %v1878_v9  ;;  %v1888_v10 = vmul.f32 %v1841_v23, %v3180_v29  ;;  %v1897_v17 = vmax.f32 %v1889_v2, 0.0 }
 0x6a7   : > { %v2611_v0 = vpop.f32.mrf.mxu1  ;;  %vm2034_vm12 = vcmp.lt.s32.totalorder %v2830_v5, %v2033_v8 }
 0x6a8   : > { %v1896_v7 = vmax.f32 %v1888_v10, 0.0  ;;  %v1891_v28 = vmul.f32 %v2611_v0, %v3209_v22  ;;  %2647 = vmatprep.mubr.f32.mxu0 %v1902_v11  ;;  %v1905_v63 = vadd.f32 %v1897_v17, %v1881_v26  ;;  %v1883_v22 = vmax.f32 %v1875_v50, 0.0  ;;  %vm2035_vm13 = vmand %vm2032_vm11, %vm2034_vm12 }
 0x6a9   : > { %v1851_v31 = vpop.f32.mrf.mxu1  ;;  %2648 = vmatmul.mubr.f32.vlgmr.msra.gmra.mxu0 %v1903_v18  ;;  %v2042_v54 = vsel %vm2035_vm13, %v2040_v4, 0.0 }
 0x6aa   : > { %v1904_v40 = vadd.f32 %v1896_v7, %v1880_v24  ;;  %v1890_v34 = vmul.f32 %v1851_v31, %v3194_v58  ;;  %v1899_v29 = vmax.f32 %v1891_v28, 0.0 }
 0x6ab   : > { %v2614_v37 = vpop.f32.mrf.mxu1 }
 0x6ac   : > { %v1898_v39 = vmax.f32 %v1890_v34, 0.0  ;;  %v1893_v56 = vmul.f32 %v2614_v37, %v3215_v30  ;;  %2650 = vmatprep.mubr.f32.mxu0 %v1904_v40  ;;  %v1907_v44 = vadd.f32 %v1899_v29, %v1883_v22 }
 0x6ad   : > { %v1861_v42 = vpop.f32.mrf.mxu1  ;;  %2651 = vmatmul.mubr.f32.gmra.mxu0 %v1905_v63 }
 0x6ae   : > { %v1906_v15 = vadd.f32 %v1898_v39, %v1882_v35  ;;  %v1892_v43 = vmul.f32 %v1861_v42, %v3203_v16  ;;  %v1901_v58 = vmax.f32 %v1893_v56, 0.0 }
 0x6b0   : > { %v1900_v46 = vmax.f32 %v1892_v43, 0.0  ;;  %2653 = vmatprep.mubr.f32.mxu0 %v1906_v15  ;;  %v1909_v48 = vadd.f32 %v1901_v58, %v1885_v47 }
 0x6b1   : > { %2654 = vmatmul.mubr.f32.gmra.mxu0 %v1907_v44 }
 0x6b2   : > { %v1908_v20 = vadd.f32 %v1900_v46, %v1884_v45 }
 0x6b4   : > { %2656 = vmatprep.mubr.f32.mxu0 %v1908_v20 }
 0x6b5   : > { %2657 = vmatmul.mubr.f32.gmra.mxu0 %v1909_v48 }
 0x6b6   : > { %2675 = vmatprep.mubr.msk.f32.mxu0 %vm2769_vm10, %v2759_v3 }
 0x769   : > { %v2649_v30 = vpop.f32.mrf.mxu0 }
 0x76b   : > { %v1992_v36 = vpop.f32.mrf.mxu0 }
 0x76d   : > { %v2652_v51 = vpop.f32.mrf.mxu0 }
 0x76f   : > { %v2002_v27 = vpop.f32.mrf.mxu0 }
 0x771   : > { %v2655_v49 = vpop.f32.mrf.mxu0 }
 0x773   : > { %v2012_v16 = vpop.f32.mrf.mxu0 }
 0x775   : > { %v2658_v52 = vpop.f32.mrf.mxu0 }
 0x776   : > { %2660 = vmatpush3.msra.mxu0 %v2658_v52 }
 0x777   : > { %v2022_v25 = vpop.f32.mrf.mxu0  ;;  %2661 = vmatprep.subr.mxu0 %v2759_v3 }
 0x778   : > { %2662 = vmatpush3.msra.mxu0 %v2022_v25 }
 0x779   : > { %2663 = vmatprep.subr.mxu0 %v2759_v3 }
 0x77a   : > { %2664 = vmatpush3.msra.mxu0 %v2655_v49 }
 0x77b   : > { %2665 = vmatprep.subr.mxu0 %v2759_v3 }
 0x77c   : > { %2666 = vmatpush3.msra.mxu0 %v2012_v16 }
 0x77d   : > { %2667 = vmatprep.subr.mxu0 %v2759_v3 }
 0x77e   : > { %2668 = vmatpush3.msra.mxu0 %v2652_v51 }
 0x77f   : > { %2669 = vmatprep.subr.mxu0 %v2759_v3 }
 0x780   : > { %2670 = vmatpush3.msra.mxu0 %v2002_v27 }
 0x781   : > { %2671 = vmatprep.subr.mxu0 %v2759_v3 }
 0x782   : > { %2672 = vmatpush3.msra.mxu0 %v2649_v30 }
 0x783   : > { %2673 = vmatprep.subr.mxu0 %v2759_v3 }
 0x784   : > { %2674 = vmatpush3.msra.mxu0 %v1992_v36 }
 0x785   : > { %2676 = vmatmul.mubr.msk.f32.vlgmr.msra.gmra.mxu0 %vm382_vm2, %v2042_v54 }
 0x845   : > { %v2112_v5 = vpop.f32.mrf.mxu0 }
 0x846   : > { %2117 = vst.msk [vmem:[%s317_s27] sm:$0xff] %vm2116_vm14, %v2112_v5 }
 0x847   : > { %v2677_v6 = vpop.f32.mrf.mxu0 }
 0x848 PF: > { %s17_s24 = sadd.s32 1, %s2757_s24  }
 0x849   : > { %p14_p5 = scmp.ge.s32.totalorder %s17_s24, 6  }
 0x84b   :  { %16 = sbr.rel (!%p14_p5) target bundleno = 1 (0x1), region = 84 }

</bundles_post_ra>
